<compile_context>
chip_gen: v6e
topology: v6e:2x2x1
jax: 0.10.0
libtpu: 0.0.40
codegen_flags: <defaults>
</compile_context>

<pallas_src>
import functools

import jax
import jax.numpy as jnp
from jax.experimental import pallas as pl
from jax.experimental.pallas import tpu as pltpu


def _round_up(x, m):
    return (x + m - 1) // m * m


def _prep_gate_cols(w, H, Hp):
    """PyTorch gate order (i,f,g,o) -> (i,f,o,g), pad each gate block H -> Hp."""
    rows = w.shape[0]
    w4 = w.reshape(rows, 4, H)
    w4 = w4[:, (0, 1, 3, 2), :]                       # (i, f, o, g)
    w4 = jnp.pad(w4, ((0, 0), (0, 0), (0, Hp - H)))
    return w4.reshape(rows, 4 * Hp)


def lstm_last_step_kernel(ei_ref, et_ref, wihi_ref, wiht_ref, whh_ref, b_ref,
                          wout_ref, bout_ref, out_ref, h_ref, c_ref, gx_ref,
                          *, t_tile, b_blk, h_pad, seq_len, n_t):
    """One grid step = one (batch block, time tile) of the LSTM recurrence.

    ei_ref/et_ref: (tt*Bb, H)  bf16  item / type embedding rows (time-major)
    wihi/wiht:     (H, 4Hp)    bf16  input->gates, split by embedding half
    whh_ref:       (Hp, 4Hp)   bf16  hidden->gates
    b_ref:         (1, 4Hp)    f32   b_ih + b_hh
    wout_ref:      (Hp, Op)    bf16  output Linear weight (transposed, padded)
    bout_ref:      (1, Op)     f32
    out_ref:       (Bb, Op)    f32   written only on the last time tile
    h_ref/c_ref:   (Bb, Hp)    f32   VMEM scratch state, carried across tiles
    gx_ref:        (tt*Bb,4Hp) f32   VMEM staging for the hoisted input proj
    """
    t = pl.program_id(1)

    @pl.when(t == 0)
    def _init():
        h_ref[...] = jnp.zeros_like(h_ref)
        c_ref[...] = jnp.zeros_like(c_ref)

    # Hoisted input projection for the whole tile: two MXU matmuls (item/type
    # halves of W_ih), bias folded in once, staged into VMEM scratch.
    gx_ref[...] = (
        jnp.dot(ei_ref[...], wihi_ref[...], preferred_element_type=jnp.float32)
        + jnp.dot(et_ref[...], wiht_ref[...], preferred_element_type=jnp.float32)
        + b_ref[...])

    h = h_ref[...]            # f32 state (1 vreg-row each; cheap to keep live)
    c = c_ref[...]

    # Only the trailing steps of the LAST tile can be out of range.
    rem = seq_len - (n_t - 1) * t_tile   # in 1..t_tile

    # Fully unrolled over the static time tile: static sublane-aligned slices of
    # gx; per step only the small recurrent dot (weights read from the VMEM ref,
    # not pinned in vregs) plus one contiguous sigmoid slab + one tanh.
    for s in range(t_tile):
        gates = gx_ref[s * b_blk:(s + 1) * b_blk, :] + jnp.dot(
            h.astype(jnp.bfloat16), whh_ref[...],
            preferred_element_type=jnp.float32)
        sig = jax.nn.sigmoid(gates[:, :3 * h_pad])      # (i | f | o) in one slab
        i_g = sig[:, 0 * h_pad:1 * h_pad]
        f_g = sig[:, 1 * h_pad:2 * h_pad]
        o_g = sig[:, 2 * h_pad:3 * h_pad]
        g_g = jnp.tanh(gates[:, 3 * h_pad:])
        c_new = f_g * c + i_g * g_g
        h_new = o_g * jnp.tanh(c_new)
        if s < rem:                                     # always valid (trace-time)
            c, h = c_new, h_new
        else:                                           # ragged last tile only
            valid = (t * t_tile + s) < seq_len
            c = jnp.where(valid, c_new, c)
            h = jnp.where(valid, h_new, h)

    h_ref[...] = h
    c_ref[...] = c

    @pl.when(t == n_t - 1)
    def _finalize():
        out_ref[...] = (jnp.dot(h.astype(jnp.bfloat16), wout_ref[...],
                                preferred_element_type=jnp.float32)
                        + bout_ref[...])


def session_lstm_forward(tokens, params, *, t_tile=32):
    """tokens: (B, T, 2) int32.  Returns (B, output_size) float32."""
    B, T, _ = tokens.shape
    H = params["emb_item"].shape[1]
    O = params["w_out"].shape[1]

    Hp = _round_up(H, 128)      # lane-aligned gate blocks
    Op = _round_up(O, 128)      # lane-dense output stores
    Bp = _round_up(B, 8)        # sublane-aligned batch

    # Batch blocking: 2 blocks lets the time-serial recurrence use both
    # TensorCores on v7x; a no-op (nb=1) for small batches / single-TC chips.
    nb = 2 if (Bp >= 16 and Bp % 16 == 0) else 1
    Bb = Bp // nb

    # Time tiling: big tiles fill MXU rows on the hoisted matmul and amortize
    # per-grid-step overhead; ragged last tile is masked (no tt=1 fallback).
    tt = max(1, min(t_tile, T))
    nt = pl.cdiv(T, tt)
    Tp = nt * tt

    # --- glue: embedding gathers (data-dependent HBM gathers) stay in JAX. ----
    # TODO(synk): nn.Embedding gather has no clean rectangular-BlockSpec form.
    emb_i = params["emb_item"][tokens[:, :, 0]]            # (B, T, H) bf16
    emb_t = params["emb_type"][tokens[:, :, 1]]            # (B, T, H) bf16

    def _blocked(e):
        # (B,T,H) -> rows grouped as (batch block, time tile, step, batch-in-block)
        e = jnp.transpose(e, (1, 0, 2))                    # (T, B, H)
        e = jnp.pad(e, ((0, Tp - T), (0, Bp - B), (0, 0)))
        e = e.reshape(nt, tt, nb, Bb, H)
        e = jnp.transpose(e, (2, 0, 1, 3, 4))              # (nb, nt, tt, Bb, H)
        return e.reshape(nb * nt * tt * Bb, H)

    ei = _blocked(emb_i)                                    # (nb*nt*tt*Bb, H) bf16
    et = _blocked(emb_t)

    # --- weight prep: gate reorder + padding ---------------------------------
    w_ih = params["w_ih"]                                   # (2H, 4H) bf16
    w_ih_item = _prep_gate_cols(w_ih[:H, :], H, Hp)         # (H, 4Hp)
    w_ih_type = _prep_gate_cols(w_ih[H:, :], H, Hp)         # (H, 4Hp)
    w_hh = _prep_gate_cols(params["w_hh"], H, Hp)
    w_hh = jnp.pad(w_hh, ((0, Hp - H), (0, 0)))             # (Hp, 4Hp)
    b_g = _prep_gate_cols(params["b_gates"], H, Hp).astype(jnp.float32)  # (1, 4Hp)
    w_out = jnp.pad(params["w_out"], ((0, Hp - H), (0, Op - O)))         # (Hp, Op)
    b_out = jnp.pad(params["b_out"], ((0, 0), (0, Op - O))).astype(jnp.float32)

    kernel = functools.partial(lstm_last_step_kernel, t_tile=tt, b_blk=Bb,
                               h_pad=Hp, seq_len=T, n_t=nt)

    # VMEM budget (explicit so v7x's 32 MiB scoped default isn't the limiter).
    emb_buf = 2 * 2 * (tt * Bb * H * 2)                                   # 2 ins, dbl-buffered
    wt_buf = 2 * (2 * H * 4 * Hp * 2 + Hp * 4 * Hp * 2 + 4 * Hp * 4
                  + Hp * Op * 2 + Op * 4)
    scr_buf = tt * Bb * 4 * Hp * 4 + 2 * Bb * Hp * 4
    out_buf = 2 * Bb * Op * 4
    vmem_limit = min(max(2 * (emb_buf + wt_buf + scr_buf + out_buf),
                         32 * 1024 * 1024), 56 * 1024 * 1024)

    out_padded = pl.pallas_call(
        kernel,
        out_shape=jax.ShapeDtypeStruct((nb * Bb, Op), jnp.float32),
        grid_spec=pltpu.PrefetchScalarGridSpec(
            num_scalar_prefetch=0,
            grid=(nb, nt),
            in_specs=[
                # time-tiled embedding streams: pipelined, double-buffered
                pl.BlockSpec((tt * Bb, H), lambda b, t: (b * nt + t, 0)),
                pl.BlockSpec((tt * Bb, H), lambda b, t: (b * nt + t, 0)),
                # weights / biases: constant blocks, resident across grid steps
                pl.BlockSpec((H, 4 * Hp), lambda b, t: (0, 0)),
                pl.BlockSpec((H, 4 * Hp), lambda b, t: (0, 0)),
                pl.BlockSpec((Hp, 4 * Hp), lambda b, t: (0, 0)),
                pl.BlockSpec((1, 4 * Hp), lambda b, t: (0, 0)),
                pl.BlockSpec((Hp, Op), lambda b, t: (0, 0)),
                pl.BlockSpec((1, Op), lambda b, t: (0, 0)),
            ],
            out_specs=pl.BlockSpec((Bb, Op), lambda b, t: (b, 0)),
            scratch_shapes=[pltpu.VMEM((Bb, Hp), jnp.float32),        # h state
                            pltpu.VMEM((Bb, Hp), jnp.float32),        # c state
                            pltpu.VMEM((tt * Bb, 4 * Hp), jnp.float32)],  # gx
        ),
        compiler_params=pltpu.CompilerParams(
            dimension_semantics=("parallel", "arbitrary"),
            vmem_limit_bytes=vmem_limit),
    )(ei, et, w_ih_item, w_ih_type, w_hh, b_g, w_out, b_out)

    return out_padded[:B, :O]


def init_params(key, input_size, num_types, hidden_size, output_size):
    ks = jax.random.split(key, 7)
    s = 0.1
    f32, bf16 = jnp.float32, jnp.bfloat16
    return {
        # embedding tables (bf16 halves HBM traffic of the dominant byte stream)
        "emb_item": (s * jax.random.normal(ks[0], (input_size, hidden_size), f32)).astype(bf16),
        "emb_type": (s * jax.random.normal(ks[1], (num_types, hidden_size), f32)).astype(bf16),
        # LSTM weights, stored transposed vs PyTorch: (in, 4H) / (H, 4H), gate order (i,f,g,o)
        "w_ih": (s * jax.random.normal(ks[2], (2 * hidden_size, 4 * hidden_size), f32)).astype(bf16),
        "w_hh": (s * jax.random.normal(ks[3], (hidden_size, 4 * hidden_size), f32)).astype(bf16),
        # b_ih + b_hh combined, kept 2D f32 for lane broadcasting
        "b_gates": s * jax.random.normal(ks[4], (1, 4 * hidden_size), f32),
        # output Linear, stored transposed: (H, O)
        "w_out": (s * jax.random.normal(ks[5], (hidden_size, output_size), f32)).astype(bf16),
        "b_out": s * jax.random.normal(ks[6], (1, output_size), f32),
    }


def session_lstm_reference(tokens, params):
    """Pure-JAX f32 reference matching the PyTorch forward (gate order i,f,g,o)."""
    H = params["emb_item"].shape[1]
    emb_i = params["emb_item"][tokens[:, :, 0]].astype(jnp.float32)
    emb_t = params["emb_type"][tokens[:, :, 1]].astype(jnp.float32)
    x = jnp.concatenate([emb_i, emb_t], axis=-1)           # (B, T, 2H)
    B, T, _ = x.shape
    w_ih = params["w_ih"].astype(jnp.float32)
    w_hh = params["w_hh"].astype(jnp.float32)
    b = params["b_gates"].astype(jnp.float32)
    h = jnp.zeros((B, H), jnp.float32)
    c = jnp.zeros((B, H), jnp.float32)
    for t in range(T):
        g = x[:, t, :] @ w_ih + h @ w_hh + b
        i_g = jax.nn.sigmoid(g[:, 0 * H:1 * H])
        f_g = jax.nn.sigmoid(g[:, 1 * H:2 * H])
        g_g = jnp.tanh(g[:, 2 * H:3 * H])
        o_g = jax.nn.sigmoid(g[:, 3 * H:4 * H])
        c = f_g * c + i_g * g_g
        h = o_g * jnp.tanh(c)
    return h @ params["w_out"].astype(jnp.float32) + params["b_out"].astype(jnp.float32)


if __name__ == "__main__":
    # small shapes consistent with the module's forward
    B, T = 2, 8
    input_size = 32      # item vocab
    num_types = 4        # len(type_encoder.classes_)
    hidden_size = 32
    output_size = 16

    key = jax.random.PRNGKey(0)
    k_tok_item, k_tok_type, k_params = jax.random.split(key, 3)

    item_ids = jax.random.randint(k_tok_item, (B, T, 1), 0, input_size, jnp.int32)
    type_ids = jax.random.randint(k_tok_type, (B, T, 1), 0, num_types, jnp.int32)
    tokens = jnp.concatenate([item_ids, type_ids], axis=-1)  # (B, T, 2)

    params = init_params(k_params, input_size, num_types, hidden_size, output_size)

    fwd = jax.jit(session_lstm_forward)
    out = fwd(tokens, params)
    jax.block_until_ready(out)
    assert out.shape == (B, output_size)

    ref = session_lstm_reference(tokens, params)
    max_err = float(jnp.max(jnp.abs(out - ref)))
    assert max_err < 5e-2, f"kernel/reference mismatch: max abs err {max_err}"

    print("KERNEL_OK")
</pallas_src>

<mosaic_0001>
module attributes {stable_mosaic.version = 11 : i64} {
  func.func @lstm_last_step_kernel(%arg0: i32, %arg1: i32, %arg2: memref<64x32xbf16, #tpu.memory_space<vmem>>, %arg3: memref<64x32xbf16, #tpu.memory_space<vmem>>, %arg4: memref<32x512xbf16, #tpu.memory_space<vmem>>, %arg5: memref<32x512xbf16, #tpu.memory_space<vmem>>, %arg6: memref<128x512xbf16, #tpu.memory_space<vmem>>, %arg7: memref<1x512xf32, #tpu.memory_space<vmem>>, %arg8: memref<128x128xbf16, #tpu.memory_space<vmem>>, %arg9: memref<1x128xf32, #tpu.memory_space<vmem>>, %arg10: memref<8x128xf32, #tpu.memory_space<vmem>>, %arg11: memref<8x128xf32, #tpu.memory_space<vmem>>, %arg12: memref<8x128xf32, #tpu.memory_space<vmem>>, %arg13: memref<64x512xf32, #tpu.memory_space<vmem>>) attributes {dimension_semantics = [#tpu.dimension_semantics<parallel>, #tpu.dimension_semantics<arbitrary>], iteration_bounds = array<i64: 1, 1>, scalar_prefetch = 0 : i64, scratch_operands = 3 : i64, tpu.core_type = #tpu.core_type<tc>, window_params = [{transform_indices = @transform_0, window_bounds = array<i64: 64, 32>}, {transform_indices = @transform_1, window_bounds = array<i64: 64, 32>}, {pipeline_mode = #tpu.pipeline_mode<synchronous>, transform_indices = @transform_2, window_bounds = array<i64: 32, 512>}, {pipeline_mode = #tpu.pipeline_mode<synchronous>, transform_indices = @transform_3, window_bounds = array<i64: 32, 512>}, {pipeline_mode = #tpu.pipeline_mode<synchronous>, transform_indices = @transform_4, window_bounds = array<i64: 128, 512>}, {pipeline_mode = #tpu.pipeline_mode<synchronous>, transform_indices = @transform_5, window_bounds = array<i64: 1, 512>}, {pipeline_mode = #tpu.pipeline_mode<synchronous>, transform_indices = @transform_6, window_bounds = array<i64: 128, 128>}, {pipeline_mode = #tpu.pipeline_mode<synchronous>, transform_indices = @transform_7, window_bounds = array<i64: 1, 128>}, {transform_indices = @transform_8, window_bounds = array<i64: 8, 128>}]} {
    %c0_i32 = arith.constant 0 : i32
    %0 = arith.cmpi eq, %arg1, %c0_i32 : i32
    %1 = arith.extui %0 : i1 to i32
    %c0_i32_0 = arith.constant 0 : i32
    %2 = arith.cmpi ne, %1, %c0_i32_0 : i32
    scf.if %2 {
      %cst_64 = arith.constant 0.000000e+00 : f32
      %189 = vector.broadcast %cst_64 : f32 to vector<8x128xf32>
      %c0_65 = arith.constant 0 : index
      %c0_66 = arith.constant 0 : index
      %190 = vector.load %arg11[%c0_65, %c0_66] : memref<8x128xf32, #tpu.memory_space<vmem>>, vector<8x128xf32>
      tpu.vector_store %arg11[%c0_65, %c0_66], %189 {strides = array<i32>} : memref<8x128xf32, #tpu.memory_space<vmem>>, vector<8x128xf32>,
      %cst_67 = arith.constant 0.000000e+00 : f32
      %191 = vector.broadcast %cst_67 : f32 to vector<8x128xf32>
      %c0_68 = arith.constant 0 : index
      %c0_69 = arith.constant 0 : index
      %192 = vector.load %arg12[%c0_68, %c0_69] : memref<8x128xf32, #tpu.memory_space<vmem>>, vector<8x128xf32>
      tpu.vector_store %arg12[%c0_68, %c0_69], %191 {strides = array<i32>} : memref<8x128xf32, #tpu.memory_space<vmem>>, vector<8x128xf32>,
    } else {
    }
    %c0 = arith.constant 0 : index
    %c0_1 = arith.constant 0 : index
    %3 = vector.load %arg2[%c0, %c0_1] : memref<64x32xbf16, #tpu.memory_space<vmem>>, vector<64x32xbf16>
    %c0_2 = arith.constant 0 : index
    %c0_3 = arith.constant 0 : index
    %4 = vector.load %arg4[%c0_2, %c0_3] : memref<32x512xbf16, #tpu.memory_space<vmem>>, vector<32x512xbf16>
    %cst = arith.constant dense<0.000000e+00> : vector<64x512xf32>
    %5 = tpu.matmul %3, %4, %cst {dimension_numbers = #tpu.dot_dimension_numbers<[1], [0], [0], [1], [0, 0, 1, 1], [], []>} : vector<64x32xbf16>, vector<32x512xbf16>, vector<64x512xf32> -> vector<64x512xf32>
    %c0_4 = arith.constant 0 : index
    %c0_5 = arith.constant 0 : index
    %6 = vector.load %arg3[%c0_4, %c0_5] : memref<64x32xbf16, #tpu.memory_space<vmem>>, vector<64x32xbf16>
    %c0_6 = arith.constant 0 : index
    %c0_7 = arith.constant 0 : index
    %7 = vector.load %arg5[%c0_6, %c0_7] : memref<32x512xbf16, #tpu.memory_space<vmem>>, vector<32x512xbf16>
    %cst_8 = arith.constant dense<0.000000e+00> : vector<64x512xf32>
    %8 = tpu.matmul %6, %7, %cst_8 {dimension_numbers = #tpu.dot_dimension_numbers<[1], [0], [0], [1], [0, 0, 1, 1], [], []>} : vector<64x32xbf16>, vector<32x512xbf16>, vector<64x512xf32> -> vector<64x512xf32>
    %9 = arith.addf %5, %8 : vector<64x512xf32>
    %c0_9 = arith.constant 0 : index
    %c0_10 = arith.constant 0 : index
    %10 = vector.load %arg7[%c0_9, %c0_10] : memref<1x512xf32, #tpu.memory_space<vmem>>, vector<1x512xf32>
    %11 = vector.broadcast %10 : vector<1x512xf32> to vector<64x512xf32>
    %12 = arith.addf %9, %11 : vector<64x512xf32>
    %c0_11 = arith.constant 0 : index
    %c0_12 = arith.constant 0 : index
    %13 = vector.load %arg13[%c0_11, %c0_12] : memref<64x512xf32, #tpu.memory_space<vmem>>, vector<64x512xf32>
    tpu.vector_store %arg13[%c0_11, %c0_12], %12 {strides = array<i32>} : memref<64x512xf32, #tpu.memory_space<vmem>>, vector<64x512xf32>,
    %c0_13 = arith.constant 0 : index
    %c0_14 = arith.constant 0 : index
    %14 = vector.load %arg11[%c0_13, %c0_14] : memref<8x128xf32, #tpu.memory_space<vmem>>, vector<8x128xf32>
    %c0_15 = arith.constant 0 : index
    %c0_16 = arith.constant 0 : index
    %15 = vector.load %arg12[%c0_15, %c0_16] : memref<8x128xf32, #tpu.memory_space<vmem>>, vector<8x128xf32>
    %c0_17 = arith.constant 0 : index
    %c0_18 = arith.constant 0 : index
    %16 = vector.load %arg13[%c0_17, %c0_18] : memref<64x512xf32, #tpu.memory_space<vmem>>, vector<8x512xf32>
    %17 = arith.truncf %14 : vector<8x128xf32> to vector<8x128xbf16>
    %c0_19 = arith.constant 0 : index
    %c0_20 = arith.constant 0 : index
    %18 = vector.load %arg6[%c0_19, %c0_20] : memref<128x512xbf16, #tpu.memory_space<vmem>>, vector<128x512xbf16>
    %cst_21 = arith.constant dense<0.000000e+00> : vector<8x512xf32>
    %19 = tpu.matmul %17, %18, %cst_21 {dimension_numbers = #tpu.dot_dimension_numbers<[1], [0], [0], [1], [0, 0, 1, 1], [], []>} : vector<8x128xbf16>, vector<128x512xbf16>, vector<8x512xf32> -> vector<8x512xf32>
    %20 = arith.addf %16, %19 : vector<8x512xf32>
    %21 = vector.extract_strided_slice %20 {offsets = [0, 0], sizes = [8, 384], strides = [1, 1]} : vector<8x512xf32> to vector<8x384xf32>
    %22 = arith.negf %21 : vector<8x384xf32>
    %23 = math.exp %22 : vector<8x384xf32>
    %cst_22 = arith.constant 1.000000e+00 : f32
    %24 = vector.broadcast %cst_22 : f32 to vector<8x384xf32>
    %25 = arith.addf %24, %23 : vector<8x384xf32>
    %26 = arith.divf %24, %25 : vector<8x384xf32>
    %27 = vector.extract_strided_slice %26 {offsets = [0, 0], sizes = [8, 128], strides = [1, 1]} : vector<8x384xf32> to vector<8x128xf32>
    %28 = vector.extract_strided_slice %26 {offsets = [0, 128], sizes = [8, 128], strides = [1, 1]} : vector<8x384xf32> to vector<8x128xf32>
    %29 = vector.extract_strided_slice %26 {offsets = [0, 256], sizes = [8, 128], strides = [1, 1]} : vector<8x384xf32> to vector<8x128xf32>
    %30 = vector.extract_strided_slice %20 {offsets = [0, 384], sizes = [8, 128], strides = [1, 1]} : vector<8x512xf32> to vector<8x128xf32>
    %31 = math.tanh %30 : vector<8x128xf32>
    %32 = arith.mulf %28, %15 : vector<8x128xf32>
    %33 = arith.mulf %27, %31 : vector<8x128xf32>
    %34 = arith.addf %32, %33 : vector<8x128xf32>
    %35 = math.tanh %34 : vector<8x128xf32>
    %36 = arith.mulf %29, %35 : vector<8x128xf32>
    %c8 = arith.constant 8 : index
    %c0_23 = arith.constant 0 : index
    %37 = vector.load %arg13[%c8, %c0_23] : memref<64x512xf32, #tpu.memory_space<vmem>>, vector<8x512xf32>
    %38 = arith.truncf %36 : vector<8x128xf32> to vector<8x128xbf16>
    %c0_24 = arith.constant 0 : index
    %c0_25 = arith.constant 0 : index
    %39 = vector.load %arg6[%c0_24, %c0_25] : memref<128x512xbf16, #tpu.memory_space<vmem>>, vector<128x512xbf16>
    %cst_26 = arith.constant dense<0.000000e+00> : vector<8x512xf32>
    %40 = tpu.matmul %38, %39, %cst_26 {dimension_numbers = #tpu.dot_dimension_numbers<[1], [0], [0], [1], [0, 0, 1, 1], [], []>} : vector<8x128xbf16>, vector<128x512xbf16>, vector<8x512xf32> -> vector<8x512xf32>
    %41 = arith.addf %37, %40 : vector<8x512xf32>
    %42 = vector.extract_strided_slice %41 {offsets = [0, 0], sizes = [8, 384], strides = [1, 1]} : vector<8x512xf32> to vector<8x384xf32>
    %43 = arith.negf %42 : vector<8x384xf32>
    %44 = math.exp %43 : vector<8x384xf32>
    %cst_27 = arith.constant 1.000000e+00 : f32
    %45 = vector.broadcast %cst_27 : f32 to vector<8x384xf32>
    %46 = arith.addf %45, %44 : vector<8x384xf32>
    %47 = arith.divf %45, %46 : vector<8x384xf32>
    %48 = vector.extract_strided_slice %47 {offsets = [0, 0], sizes = [8, 128], strides = [1, 1]} : vector<8x384xf32> to vector<8x128xf32>
    %49 = vector.extract_strided_slice %47 {offsets = [0, 128], sizes = [8, 128], strides = [1, 1]} : vector<8x384xf32> to vector<8x128xf32>
    %50 = vector.extract_strided_slice %47 {offsets = [0, 256], sizes = [8, 128], strides = [1, 1]} : vector<8x384xf32> to vector<8x128xf32>
    %51 = vector.extract_strided_slice %41 {offsets = [0, 384], sizes = [8, 128], strides = [1, 1]} : vector<8x512xf32> to vector<8x128xf32>
    %52 = math.tanh %51 : vector<8x128xf32>
    %53 = arith.mulf %49, %34 : vector<8x128xf32>
    %54 = arith.mulf %48, %52 : vector<8x128xf32>
    %55 = arith.addf %53, %54 : vector<8x128xf32>
    %56 = math.tanh %55 : vector<8x128xf32>
    %57 = arith.mulf %50, %56 : vector<8x128xf32>
    %c16 = arith.constant 16 : index
    %c0_28 = arith.constant 0 : index
    %58 = vector.load %arg13[%c16, %c0_28] : memref<64x512xf32, #tpu.memory_space<vmem>>, vector<8x512xf32>
    %59 = arith.truncf %57 : vector<8x128xf32> to vector<8x128xbf16>
    %c0_29 = arith.constant 0 : index
    %c0_30 = arith.constant 0 : index
    %60 = vector.load %arg6[%c0_29, %c0_30] : memref<128x512xbf16, #tpu.memory_space<vmem>>, vector<128x512xbf16>
    %cst_31 = arith.constant dense<0.000000e+00> : vector<8x512xf32>
    %61 = tpu.matmul %59, %60, %cst_31 {dimension_numbers = #tpu.dot_dimension_numbers<[1], [0], [0], [1], [0, 0, 1, 1], [], []>} : vector<8x128xbf16>, vector<128x512xbf16>, vector<8x512xf32> -> vector<8x512xf32>
    %62 = arith.addf %58, %61 : vector<8x512xf32>
    %63 = vector.extract_strided_slice %62 {offsets = [0, 0], sizes = [8, 384], strides = [1, 1]} : vector<8x512xf32> to vector<8x384xf32>
    %64 = arith.negf %63 : vector<8x384xf32>
    %65 = math.exp %64 : vector<8x384xf32>
    %cst_32 = arith.constant 1.000000e+00 : f32
    %66 = vector.broadcast %cst_32 : f32 to vector<8x384xf32>
    %67 = arith.addf %66, %65 : vector<8x384xf32>
    %68 = arith.divf %66, %67 : vector<8x384xf32>
    %69 = vector.extract_strided_slice %68 {offsets = [0, 0], sizes = [8, 128], strides = [1, 1]} : vector<8x384xf32> to vector<8x128xf32>
    %70 = vector.extract_strided_slice %68 {offsets = [0, 128], sizes = [8, 128], strides = [1, 1]} : vector<8x384xf32> to vector<8x128xf32>
    %71 = vector.extract_strided_slice %68 {offsets = [0, 256], sizes = [8, 128], strides = [1, 1]} : vector<8x384xf32> to vector<8x128xf32>
    %72 = vector.extract_strided_slice %62 {offsets = [0, 384], sizes = [8, 128], strides = [1, 1]} : vector<8x512xf32> to vector<8x128xf32>
    %73 = math.tanh %72 : vector<8x128xf32>
    %74 = arith.mulf %70, %55 : vector<8x128xf32>
    %75 = arith.mulf %69, %73 : vector<8x128xf32>
    %76 = arith.addf %74, %75 : vector<8x128xf32>
    %77 = math.tanh %76 : vector<8x128xf32>
    %78 = arith.mulf %71, %77 : vector<8x128xf32>
    %c24 = arith.constant 24 : index
    %c0_33 = arith.constant 0 : index
    %79 = vector.load %arg13[%c24, %c0_33] : memref<64x512xf32, #tpu.memory_space<vmem>>, vector<8x512xf32>
    %80 = arith.truncf %78 : vector<8x128xf32> to vector<8x128xbf16>
    %c0_34 = arith.constant 0 : index
    %c0_35 = arith.constant 0 : index
    %81 = vector.load %arg6[%c0_34, %c0_35] : memref<128x512xbf16, #tpu.memory_space<vmem>>, vector<128x512xbf16>
    %cst_36 = arith.constant dense<0.000000e+00> : vector<8x512xf32>
    %82 = tpu.matmul %80, %81, %cst_36 {dimension_numbers = #tpu.dot_dimension_numbers<[1], [0], [0], [1], [0, 0, 1, 1], [], []>} : vector<8x128xbf16>, vector<128x512xbf16>, vector<8x512xf32> -> vector<8x512xf32>
    %83 = arith.addf %79, %82 : vector<8x512xf32>
    %84 = vector.extract_strided_slice %83 {offsets = [0, 0], sizes = [8, 384], strides = [1, 1]} : vector<8x512xf32> to vector<8x384xf32>
    %85 = arith.negf %84 : vector<8x384xf32>
    %86 = math.exp %85 : vector<8x384xf32>
    %cst_37 = arith.constant 1.000000e+00 : f32
    %87 = vector.broadcast %cst_37 : f32 to vector<8x384xf32>
    %88 = arith.addf %87, %86 : vector<8x384xf32>
    %89 = arith.divf %87, %88 : vector<8x384xf32>
    %90 = vector.extract_strided_slice %89 {offsets = [0, 0], sizes = [8, 128], strides = [1, 1]} : vector<8x384xf32> to vector<8x128xf32>
    %91 = vector.extract_strided_slice %89 {offsets = [0, 128], sizes = [8, 128], strides = [1, 1]} : vector<8x384xf32> to vector<8x128xf32>
    %92 = vector.extract_strided_slice %89 {offsets = [0, 256], sizes = [8, 128], strides = [1, 1]} : vector<8x384xf32> to vector<8x128xf32>
    %93 = vector.extract_strided_slice %83 {offsets = [0, 384], sizes = [8, 128], strides = [1, 1]} : vector<8x512xf32> to vector<8x128xf32>
    %94 = math.tanh %93 : vector<8x128xf32>
    %95 = arith.mulf %91, %76 : vector<8x128xf32>
    %96 = arith.mulf %90, %94 : vector<8x128xf32>
    %97 = arith.addf %95, %96 : vector<8x128xf32>
    %98 = math.tanh %97 : vector<8x128xf32>
    %99 = arith.mulf %92, %98 : vector<8x128xf32>
    %c32 = arith.constant 32 : index
    %c0_38 = arith.constant 0 : index
    %100 = vector.load %arg13[%c32, %c0_38] : memref<64x512xf32, #tpu.memory_space<vmem>>, vector<8x512xf32>
    %101 = arith.truncf %99 : vector<8x128xf32> to vector<8x128xbf16>
    %c0_39 = arith.constant 0 : index
    %c0_40 = arith.constant 0 : index
    %102 = vector.load %arg6[%c0_39, %c0_40] : memref<128x512xbf16, #tpu.memory_space<vmem>>, vector<128x512xbf16>
    %cst_41 = arith.constant dense<0.000000e+00> : vector<8x512xf32>
    %103 = tpu.matmul %101, %102, %cst_41 {dimension_numbers = #tpu.dot_dimension_numbers<[1], [0], [0], [1], [0, 0, 1, 1], [], []>} : vector<8x128xbf16>, vector<128x512xbf16>, vector<8x512xf32> -> vector<8x512xf32>
    %104 = arith.addf %100, %103 : vector<8x512xf32>
    %105 = vector.extract_strided_slice %104 {offsets = [0, 0], sizes = [8, 384], strides = [1, 1]} : vector<8x512xf32> to vector<8x384xf32>
    %106 = arith.negf %105 : vector<8x384xf32>
    %107 = math.exp %106 : vector<8x384xf32>
    %cst_42 = arith.constant 1.000000e+00 : f32
    %108 = vector.broadcast %cst_42 : f32 to vector<8x384xf32>
    %109 = arith.addf %108, %107 : vector<8x384xf32>
    %110 = arith.divf %108, %109 : vector<8x384xf32>
    %111 = vector.extract_strided_slice %110 {offsets = [0, 0], sizes = [8, 128], strides = [1, 1]} : vector<8x384xf32> to vector<8x128xf32>
    %112 = vector.extract_strided_slice %110 {offsets = [0, 128], sizes = [8, 128], strides = [1, 1]} : vector<8x384xf32> to vector<8x128xf32>
    %113 = vector.extract_strided_slice %110 {offsets = [0, 256], sizes = [8, 128], strides = [1, 1]} : vector<8x384xf32> to vector<8x128xf32>
    %114 = vector.extract_strided_slice %104 {offsets = [0, 384], sizes = [8, 128], strides = [1, 1]} : vector<8x512xf32> to vector<8x128xf32>
    %115 = math.tanh %114 : vector<8x128xf32>
    %116 = arith.mulf %112, %97 : vector<8x128xf32>
    %117 = arith.mulf %111, %115 : vector<8x128xf32>
    %118 = arith.addf %116, %117 : vector<8x128xf32>
    %119 = math.tanh %118 : vector<8x128xf32>
    %120 = arith.mulf %113, %119 : vector<8x128xf32>
    %c40 = arith.constant 40 : index
    %c0_43 = arith.constant 0 : index
    %121 = vector.load %arg13[%c40, %c0_43] : memref<64x512xf32, #tpu.memory_space<vmem>>, vector<8x512xf32>
    %122 = arith.truncf %120 : vector<8x128xf32> to vector<8x128xbf16>
    %c0_44 = arith.constant 0 : index
    %c0_45 = arith.constant 0 : index
    %123 = vector.load %arg6[%c0_44, %c0_45] : memref<128x512xbf16, #tpu.memory_space<vmem>>, vector<128x512xbf16>
    %cst_46 = arith.constant dense<0.000000e+00> : vector<8x512xf32>
    %124 = tpu.matmul %122, %123, %cst_46 {dimension_numbers = #tpu.dot_dimension_numbers<[1], [0], [0], [1], [0, 0, 1, 1], [], []>} : vector<8x128xbf16>, vector<128x512xbf16>, vector<8x512xf32> -> vector<8x512xf32>
    %125 = arith.addf %121, %124 : vector<8x512xf32>
    %126 = vector.extract_strided_slice %125 {offsets = [0, 0], sizes = [8, 384], strides = [1, 1]} : vector<8x512xf32> to vector<8x384xf32>
    %127 = arith.negf %126 : vector<8x384xf32>
    %128 = math.exp %127 : vector<8x384xf32>
    %cst_47 = arith.constant 1.000000e+00 : f32
    %129 = vector.broadcast %cst_47 : f32 to vector<8x384xf32>
    %130 = arith.addf %129, %128 : vector<8x384xf32>
    %131 = arith.divf %129, %130 : vector<8x384xf32>
    %132 = vector.extract_strided_slice %131 {offsets = [0, 0], sizes = [8, 128], strides = [1, 1]} : vector<8x384xf32> to vector<8x128xf32>
    %133 = vector.extract_strided_slice %131 {offsets = [0, 128], sizes = [8, 128], strides = [1, 1]} : vector<8x384xf32> to vector<8x128xf32>
    %134 = vector.extract_strided_slice %131 {offsets = [0, 256], sizes = [8, 128], strides = [1, 1]} : vector<8x384xf32> to vector<8x128xf32>
    %135 = vector.extract_strided_slice %125 {offsets = [0, 384], sizes = [8, 128], strides = [1, 1]} : vector<8x512xf32> to vector<8x128xf32>
    %136 = math.tanh %135 : vector<8x128xf32>
    %137 = arith.mulf %133, %118 : vector<8x128xf32>
    %138 = arith.mulf %132, %136 : vector<8x128xf32>
    %139 = arith.addf %137, %138 : vector<8x128xf32>
    %140 = math.tanh %139 : vector<8x128xf32>
    %141 = arith.mulf %134, %140 : vector<8x128xf32>
    %c48 = arith.constant 48 : index
    %c0_48 = arith.constant 0 : index
    %142 = vector.load %arg13[%c48, %c0_48] : memref<64x512xf32, #tpu.memory_space<vmem>>, vector<8x512xf32>
    %143 = arith.truncf %141 : vector<8x128xf32> to vector<8x128xbf16>
    %c0_49 = arith.constant 0 : index
    %c0_50 = arith.constant 0 : index
    %144 = vector.load %arg6[%c0_49, %c0_50] : memref<128x512xbf16, #tpu.memory_space<vmem>>, vector<128x512xbf16>
    %cst_51 = arith.constant dense<0.000000e+00> : vector<8x512xf32>
    %145 = tpu.matmul %143, %144, %cst_51 {dimension_numbers = #tpu.dot_dimension_numbers<[1], [0], [0], [1], [0, 0, 1, 1], [], []>} : vector<8x128xbf16>, vector<128x512xbf16>, vector<8x512xf32> -> vector<8x512xf32>
    %146 = arith.addf %142, %145 : vector<8x512xf32>
    %147 = vector.extract_strided_slice %146 {offsets = [0, 0], sizes = [8, 384], strides = [1, 1]} : vector<8x512xf32> to vector<8x384xf32>
    %148 = arith.negf %147 : vector<8x384xf32>
    %149 = math.exp %148 : vector<8x384xf32>
    %cst_52 = arith.constant 1.000000e+00 : f32
    %150 = vector.broadcast %cst_52 : f32 to vector<8x384xf32>
    %151 = arith.addf %150, %149 : vector<8x384xf32>
    %152 = arith.divf %150, %151 : vector<8x384xf32>
    %153 = vector.extract_strided_slice %152 {offsets = [0, 0], sizes = [8, 128], strides = [1, 1]} : vector<8x384xf32> to vector<8x128xf32>
    %154 = vector.extract_strided_slice %152 {offsets = [0, 128], sizes = [8, 128], strides = [1, 1]} : vector<8x384xf32> to vector<8x128xf32>
    %155 = vector.extract_strided_slice %152 {offsets = [0, 256], sizes = [8, 128], strides = [1, 1]} : vector<8x384xf32> to vector<8x128xf32>
    %156 = vector.extract_strided_slice %146 {offsets = [0, 384], sizes = [8, 128], strides = [1, 1]} : vector<8x512xf32> to vector<8x128xf32>
    %157 = math.tanh %156 : vector<8x128xf32>
    %158 = arith.mulf %154, %139 : vector<8x128xf32>
    %159 = arith.mulf %153, %157 : vector<8x128xf32>
    %160 = arith.addf %158, %159 : vector<8x128xf32>
    %161 = math.tanh %160 : vector<8x128xf32>
    %162 = arith.mulf %155, %161 : vector<8x128xf32>
    %c56 = arith.constant 56 : index
    %c0_53 = arith.constant 0 : index
    %163 = vector.load %arg13[%c56, %c0_53] : memref<64x512xf32, #tpu.memory_space<vmem>>, vector<8x512xf32>
    %164 = arith.truncf %162 : vector<8x128xf32> to vector<8x128xbf16>
    %c0_54 = arith.constant 0 : index
    %c0_55 = arith.constant 0 : index
    %165 = vector.load %arg6[%c0_54, %c0_55] : memref<128x512xbf16, #tpu.memory_space<vmem>>, vector<128x512xbf16>
    %cst_56 = arith.constant dense<0.000000e+00> : vector<8x512xf32>
    %166 = tpu.matmul %164, %165, %cst_56 {dimension_numbers = #tpu.dot_dimension_numbers<[1], [0], [0], [1], [0, 0, 1, 1], [], []>} : vector<8x128xbf16>, vector<128x512xbf16>, vector<8x512xf32> -> vector<8x512xf32>
    %167 = arith.addf %163, %166 : vector<8x512xf32>
    %168 = vector.extract_strided_slice %167 {offsets = [0, 0], sizes = [8, 384], strides = [1, 1]} : vector<8x512xf32> to vector<8x384xf32>
    %169 = arith.negf %168 : vector<8x384xf32>
    %170 = math.exp %169 : vector<8x384xf32>
    %cst_57 = arith.constant 1.000000e+00 : f32
    %171 = vector.broadcast %cst_57 : f32 to vector<8x384xf32>
    %172 = arith.addf %171, %170 : vector<8x384xf32>
    %173 = arith.divf %171, %172 : vector<8x384xf32>
    %174 = vector.extract_strided_slice %173 {offsets = [0, 0], sizes = [8, 128], strides = [1, 1]} : vector<8x384xf32> to vector<8x128xf32>
    %175 = vector.extract_strided_slice %173 {offsets = [0, 128], sizes = [8, 128], strides = [1, 1]} : vector<8x384xf32> to vector<8x128xf32>
    %176 = vector.extract_strided_slice %173 {offsets = [0, 256], sizes = [8, 128], strides = [1, 1]} : vector<8x384xf32> to vector<8x128xf32>
    %177 = vector.extract_strided_slice %167 {offsets = [0, 384], sizes = [8, 128], strides = [1, 1]} : vector<8x512xf32> to vector<8x128xf32>
    %178 = math.tanh %177 : vector<8x128xf32>
    %179 = arith.mulf %175, %160 : vector<8x128xf32>
    %180 = arith.mulf %174, %178 : vector<8x128xf32>
    %181 = arith.addf %179, %180 : vector<8x128xf32>
    %182 = math.tanh %181 : vector<8x128xf32>
    %183 = arith.mulf %176, %182 : vector<8x128xf32>
    %c0_58 = arith.constant 0 : index
    %c0_59 = arith.constant 0 : index
    %184 = vector.load %arg11[%c0_58, %c0_59] : memref<8x128xf32, #tpu.memory_space<vmem>>, vector<8x128xf32>
    tpu.vector_store %arg11[%c0_58, %c0_59], %183 {strides = array<i32>} : memref<8x128xf32, #tpu.memory_space<vmem>>, vector<8x128xf32>,
    %c0_60 = arith.constant 0 : index
    %c0_61 = arith.constant 0 : index
    %185 = vector.load %arg12[%c0_60, %c0_61] : memref<8x128xf32, #tpu.memory_space<vmem>>, vector<8x128xf32>
    tpu.vector_store %arg12[%c0_60, %c0_61], %181 {strides = array<i32>} : memref<8x128xf32, #tpu.memory_space<vmem>>, vector<8x128xf32>,
    %c0_i32_62 = arith.constant 0 : i32
    %186 = arith.cmpi eq, %arg1, %c0_i32_62 : i32
    %187 = arith.extui %186 : i1 to i32
    %c0_i32_63 = arith.constant 0 : i32
    %188 = arith.cmpi ne, %187, %c0_i32_63 : i32
    scf.if %188 {
      %189 = arith.truncf %183 : vector<8x128xf32> to vector<8x128xbf16>
      %c0_64 = arith.constant 0 : index
      %c0_65 = arith.constant 0 : index
      %190 = vector.load %arg8[%c0_64, %c0_65] : memref<128x128xbf16, #tpu.memory_space<vmem>>, vector<128x128xbf16>
      %cst_66 = arith.constant dense<0.000000e+00> : vector<8x128xf32>
      %191 = tpu.matmul %189, %190, %cst_66 {dimension_numbers = #tpu.dot_dimension_numbers<[1], [0], [0], [1], [0, 0, 1, 1], [], []>} : vector<8x128xbf16>, vector<128x128xbf16>, vector<8x128xf32> -> vector<8x128xf32>
      %c0_67 = arith.constant 0 : index
      %c0_68 = arith.constant 0 : index
      %192 = vector.load %arg9[%c0_67, %c0_68] : memref<1x128xf32, #tpu.memory_space<vmem>>, vector<1x128xf32>
      %193 = vector.broadcast %192 : vector<1x128xf32> to vector<8x128xf32>
      %194 = arith.addf %191, %193 : vector<8x128xf32>
      %c0_69 = arith.constant 0 : index
      %c0_70 = arith.constant 0 : index
      %195 = vector.load %arg10[%c0_69, %c0_70] : memref<8x128xf32, #tpu.memory_space<vmem>>, vector<8x128xf32>
      tpu.vector_store %arg10[%c0_69, %c0_70], %194 {strides = array<i32>} : memref<8x128xf32, #tpu.memory_space<vmem>>, vector<8x128xf32>,
    } else {
    }
    return
  }
  func.func @transform_0(%arg0: i32, %arg1: i32) -> (i32, i32) {
    %c1_i32 = arith.constant 1 : i32
    %0 = arith.muli %arg0, %c1_i32 : i32
    %1 = arith.addi %0, %arg1 : i32
    %c0_i32 = arith.constant 0 : i32
    %c0_i32_0 = arith.constant 0 : i32
    return %1, %c0_i32 : i32, i32
  }
  func.func @transform_1(%arg0: i32, %arg1: i32) -> (i32, i32) {
    %c1_i32 = arith.constant 1 : i32
    %0 = arith.muli %arg0, %c1_i32 : i32
    %1 = arith.addi %0, %arg1 : i32
    %c0_i32 = arith.constant 0 : i32
    %c0_i32_0 = arith.constant 0 : i32
    return %1, %c0_i32 : i32, i32
  }
  func.func @transform_2(%arg0: i32, %arg1: i32) -> (i32, i32) {
    %c0_i32 = arith.constant 0 : i32
    %c0_i32_0 = arith.constant 0 : i32
    %c0_i32_1 = arith.constant 0 : i32
    return %c0_i32, %c0_i32_0 : i32, i32
  }
  func.func @transform_3(%arg0: i32, %arg1: i32) -> (i32, i32) {
    %c0_i32 = arith.constant 0 : i32
    %c0_i32_0 = arith.constant 0 : i32
    %c0_i32_1 = arith.constant 0 : i32
    return %c0_i32, %c0_i32_0 : i32, i32
  }
  func.func @transform_4(%arg0: i32, %arg1: i32) -> (i32, i32) {
    %c0_i32 = arith.constant 0 : i32
    %c0_i32_0 = arith.constant 0 : i32
    %c0_i32_1 = arith.constant 0 : i32
    return %c0_i32, %c0_i32_0 : i32, i32
  }
  func.func @transform_5(%arg0: i32, %arg1: i32) -> (i32, i32) {
    %c0_i32 = arith.constant 0 : i32
    %c0_i32_0 = arith.constant 0 : i32
    %c0_i32_1 = arith.constant 0 : i32
    return %c0_i32, %c0_i32_0 : i32, i32
  }
  func.func @transform_6(%arg0: i32, %arg1: i32) -> (i32, i32) {
    %c0_i32 = arith.constant 0 : i32
    %c0_i32_0 = arith.constant 0 : i32
    %c0_i32_1 = arith.constant 0 : i32
    return %c0_i32, %c0_i32_0 : i32, i32
  }
  func.func @transform_7(%arg0: i32, %arg1: i32) -> (i32, i32) {
    %c0_i32 = arith.constant 0 : i32
    %c0_i32_0 = arith.constant 0 : i32
    %c0_i32_1 = arith.constant 0 : i32
    return %c0_i32, %c0_i32_0 : i32, i32
  }
  func.func @transform_8(%arg0: i32, %arg1: i32) -> (i32, i32) {
    %c0_i32 = arith.constant 0 : i32
    %c0_i32_0 = arith.constant 0 : i32
    return %arg0, %c0_i32 : i32, i32
  }
}

</mosaic_0001>

<bundles_post_ra>
// kernel: session_lstm_forward.1
= control target key start
LH: loop header
LB: loop body
LE: loop exit
PB: predicated region body
PF: predicated region fallthrough
CT: control target
= control target key end

     0   :  { %v3278_v1 = vmov 0   ;;  %vm172_vm0 = vcmask 261120   ;;  %v2274_v44 = vmov 0.0|0.0   ;;  %vm2276_vm1 = vmmov 0   ;;  %s3269_s3 = inlined_call_operand.vmem [shape: bf16[32,512], index: 3, kind: input, shape index: {}]   ;;  %s3270_s1 = inlined_call_operand.vmem [shape: bf16[64,32], index: 1, kind: input, shape index: {}]   ;;  %s3271_s2 = inlined_call_operand.vmem [shape: bf16[32,512], index: 2, kind: input, shape index: {}]   ;;  %s3272_s0 = inlined_call_operand.vmem [shape: bf16[64,32], index: 0, kind: input, shape index: {}]   ;;  %s3273_s4 = inlined_call_operand.vmem [shape: bf16[128,512], index: 4, kind: input, shape index: {}]   ;;  %s3274_s5 = inlined_call_operand.vmem [shape: f32[1,512], index: 5, kind: input, shape index: {}]   ;;  %s3275_s6 = inlined_call_operand.vmem [shape: bf16[128,128], index: 6, kind: input, shape index: {}]   ;;  %s3276_s7 = inlined_call_operand.vmem [shape: f32[1,128], index: 7, kind: input, shape index: {}]   ;;  %s3277_s8 = inlined_call_operand.vmem [shape: f32[8,128], index: 8, kind: output, shape index: {}]  }
   0x1   :  { %v2025_v0 = vld [vmem:[%s3269_s3 + $0x24] ss:$16 sps:$4 sm:$0xff]   ;;  %217 = vmatprep.mubr.bf16.mxu0 %v3278_v1  ;;  %237 = vmatprep.mubr.bf16.mxu1 %v3278_v1  ;;  %v2027_v2 = vld [vmem:[%s3269_s3 + $0x20] ss:$16 sps:$4 sm:$0xff]   ;;  %v2035_v6 = vld [vmem:[%s3269_s3 + $0x2c] ss:$16 sps:$4 sm:$0xff]  }
   0x2   :  { %197 = vmatprep.subr.bf16.mxu0 %v2025_v0  ;;  %2017 = vmatprep.subr.bf16.mxu1 %v2025_v0  ;;  %v2028_v3 = vld [vmem:[%s3269_s3 + $0x4] ss:$16 sps:$4 sm:$0xff]   ;;  %v2030_v4 = vld [vmem:[%s3269_s3] ss:$16 sps:$4 sm:$0xff]   ;;  %v2033_v8 = vld [vmem:[%s3269_s3 + $0x28] ss:$16 sps:$4 sm:$0xff]  }
   0x3   :  { %198 = vmatpush1.bf16.msra.mxu0 %v2027_v2  ;;  %2019 = vmatpush1.bf16.msra.mxu1 %v2027_v2  ;;  %v2031_v5 = vld [vmem:[%s3270_s1] sm:$0xff]   ;;  %v2345_v7 = vld [vmem:[%s3270_s1 + $0x10] sm:$0xff]   ;;  %v2040_v9 = vld [vmem:[%s3269_s3 + $0xc] ss:$16 sps:$4 sm:$0xff]  }
   0x4   :  { %199 = vmatprep.subr.bf16.mxu0 %v2028_v3  ;;  %2018 = vmatprep.subr.bf16.mxu1 %v2028_v3  ;;  %v2041_v10 = vld [vmem:[%s3271_s2 + $0x20] ss:$16 sps:$4 sm:$0xff]   ;;  %v2043_v11 = vld [vmem:[%s3271_s2 + $0x24] ss:$16 sps:$4 sm:$0xff]   ;;  %v2038_v12 = vld [vmem:[%s3269_s3 + $0x8] ss:$16 sps:$4 sm:$0xff]  }
   0x5   :  { %v2046_v13 = vld [vmem:[%s3271_s2 + $0x4] ss:$16 sps:$4 sm:$0xff]   ;;  %v2036_v14 = vld [vmem:[%s3270_s1 + $0x8] sm:$0xff]   ;;  %v2376_v15 = vld [vmem:[%s3270_s1 + $0x18] sm:$0xff]  }
   0x6   :  { %v2050_v16 = vld [vmem:[%s3271_s2 + $0x2c] ss:$16 sps:$4 sm:$0xff]   ;;  %v2044_v17 = vld [vmem:[%s3271_s2] ss:$16 sps:$4 sm:$0xff]   ;;  %v2387_v18 = vld [vmem:[%s3273_s4 + $0xe4] ss:$16 sps:$4 sm:$0xff]  }
   0x7   :  { %200 = vmatpush1.bf16.msra.mxu0 %v2030_v4  ;;  %2020 = vmatpush1.bf16.msra.mxu1 %v2030_v4  ;;  %3298 = vst [vmem:[#allocation5_spill] sm:$0xff] %v2387_v18  ;;  %v2047_v19 = vld [vmem:[%s3272_s0] sm:$0xff]   ;;  %v2048_v20 = vld [vmem:[%s3271_s2 + $0x28] ss:$16 sps:$4 sm:$0xff]   ;;  %v2067_v23 = vld [vmem:[%s3271_s2 + $0xc] ss:$16 sps:$4 sm:$0xff]  }
   0x8   :  { %270 = vmatprep.subr.bf16.mxu1 %v2035_v6  ;;  %415 = vmatprep.subr.bf16.mxu0 %v2043_v11  ;;  %v2404_v21 = vld [vmem:[%s3273_s4 + $0xe0] ss:$16 sps:$4 sm:$0xff]   ;;  %v2409_v22 = vld [vmem:[%s3273_s4 + $0xc4] ss:$16 sps:$4 sm:$0xff]   ;;  %v2065_v25 = vld [vmem:[%s3271_s2 + $0x8] ss:$16 sps:$4 sm:$0xff]  }
   0x9   :  { %v2420_v24 = vld [vmem:[%s3273_s4 + $0xc0] ss:$16 sps:$4 sm:$0xff]   ;;  %v2430_v26 = vld [vmem:[%s3273_s4 + $0xa4] ss:$16 sps:$4 sm:$0xff]   ;;  %v2057_v27 = vld [vmem:[%s3272_s0 + $0x8] sm:$0xff]  }
   0xa   :  { %1895 = vmatmul.mubr.msk.bf16.vlgmr.msra.gmra.mxu0 %vm172_vm0, %v2031_v5  ;;  %1897 = vmatmul.mubr.msk.bf16.vlgmr.msra.gmra.mxu1 %vm172_vm0, %v2345_v7  ;;  %v2439_v28 = vld [vmem:[%s3273_s4 + $0xec] ss:$16 sps:$4 sm:$0xff]   ;;  %v2445_v29 = vld [vmem:[%s3273_s4 + $0xa0] ss:$16 sps:$4 sm:$0xff]   ;;  %v2451_v30 = vld [vmem:[%s3273_s4 + $0x84] ss:$16 sps:$4 sm:$0xff]  }
   0xb   :  { %271 = vmatpush1.bf16.msra.mxu1 %v2033_v8  ;;  %227 = vmatprep.mubr.bf16.mxu0 %v3278_v1  ;;  %3299 = vst [vmem:[#allocation6_spill] sm:$0xff] %v2439_v28  ;;  %v2460_v31 = vld [vmem:[%s3273_s4 + $0x80] ss:$16 sps:$4 sm:$0xff]   ;;  %v2468_v32 = vld [vmem:[%s3273_s4 + $0x64] ss:$16 sps:$4 sm:$0xff]   ;;  %v2074_v38 = vld [vmem:[%s3272_s0 + $0x18] sm:$0xff]  }
   0xc   :  { %247 = vmatprep.mubr.bf16.mxu1 %v3278_v1  ;;  %272 = vmatprep.subr.bf16.mxu1 %v2040_v9  ;;  %v2064_v33 = vld [vmem:[%s3272_s0 + $0x10] sm:$0xff]   ;;  %v2533_v42 = vld [vmem:[%s3273_s4 + $0xe8] ss:$16 sps:$4 sm:$0xff]   ;;  %v2538_v43 = vld [vmem:[%s3273_s4 + $0xcc] ss:$16 sps:$4 sm:$0xff]  }
   0xd   :  { %416 = vmatpush1.bf16.msra.mxu0 %v2041_v10  ;;  %v2477_v34 = vld [vmem:[%s3273_s4 + $0x60] ss:$16 sps:$4 sm:$0xff]   ;;  %v2483_v35 = vld [vmem:[%s3273_s4 + $0x44] ss:$16 sps:$4 sm:$0xff]   ;;  %v2546_v45 = vld [vmem:[%s3273_s4 + $0xc8] ss:$16 sps:$4 sm:$0xff]  }
   0xe   :  { %417 = vmatprep.subr.bf16.mxu0 %v2046_v13  ;;  %v2492_v36 = vld [vmem:[%s3273_s4 + $0x40] ss:$16 sps:$4 sm:$0xff]   ;;  %v2500_v37 = vld [vmem:[%s3273_s4 + $0x24] ss:$16 sps:$4 sm:$0xff]   ;;  %v2553_v46 = vld [vmem:[%s3273_s4 + $0xac] ss:$16 sps:$4 sm:$0xff]  }
   0xf   :  { %273 = vmatpush1.bf16.msra.mxu1 %v2038_v12  ;;  %v2509_v39 = vld [vmem:[%s3273_s4 + $0x20] ss:$16 sps:$4 sm:$0xff]   ;;  %v2515_v40 = vld [vmem:[%s3273_s4 + $0x4] ss:$16 sps:$4 sm:$0xff]   ;;  %v2562_v47 = vld [vmem:[%s3273_s4 + $0xa8] ss:$16 sps:$4 sm:$0xff]  }
  0x10   :  { %488 = vmatprep.subr.bf16.mxu1 %v2050_v16  ;;  %3300 = vst [vmem:[#allocation7_spill] sm:$0xff] %v2509_v39  ;;  %3301 = vst [vmem:[#allocation8_spill] sm:$0xff] %v2515_v40  ;;  %v2524_v41 = vld [vmem:[%s3273_s4] ss:$16 sps:$4 sm:$0xff]   ;;  %v2568_v48 = vld [vmem:[%s3273_s4 + $0x8c] ss:$16 sps:$4 sm:$0xff]  }
  0x11   :  { %418 = vmatpush1.bf16.msra.mxu0 %v2044_v17  ;;  %3302 = vst [vmem:[#allocation9_spill] sm:$0xff] %v2524_v41  ;;  %v2577_v49 = vld [vmem:[%s3273_s4 + $0x88] ss:$16 sps:$4 sm:$0xff]   ;;  %v2584_v50 = vld [vmem:[%s3273_s4 + $0x6c] ss:$16 sps:$4 sm:$0xff]  }
  0x12   :  { %1896 = vmatmul.mubr.msk.bf16.gmra.mxu0 %vm172_vm0, %v2036_v14  ;;  %1898 = vmatmul.mubr.msk.bf16.gmra.mxu1 %vm172_vm0, %v2376_v15  ;;  %v2592_v51 = vld [vmem:[%s3273_s4 + $0x68] ss:$16 sps:$4 sm:$0xff]   ;;  %v2598_v52 = vld [vmem:[%s3273_s4 + $0x4c] ss:$16 sps:$4 sm:$0xff]  }
  0x13   :  { %290 = vmatprep.mubr.bf16.mxu1 %v3278_v1  ;;  %435 = vmatprep.mubr.bf16.mxu0 %v3278_v1  ;;  %v2607_v53 = vld [vmem:[%s3273_s4 + $0x48] ss:$16 sps:$4 sm:$0xff]   ;;  %v2614_v54 = vld [vmem:[%s3273_s4 + $0x2c] ss:$16 sps:$4 sm:$0xff]  }
  0x14   :  { %834 = vmatprep.subr.bf16.mxu0 %v2387_v18  ;;  %3303 = vst [vmem:[#allocation10_spill] sm:$0xff] %v2614_v54  ;;  %v2622_v55 = vld [vmem:[%s3273_s4 + $0x28] ss:$16 sps:$4 sm:$0xff]   ;;  %v2628_v56 = vld [vmem:[%s3273_s4 + $0xc] ss:$16 sps:$4 sm:$0xff]  }
  0x15   :  { %3304 = vst [vmem:[#allocation11_spill] sm:$0xff] %v2622_v55  ;;  %3305 = vst [vmem:[#allocation12_spill] sm:$0xff] %v2628_v56  ;;  %v2637_v57 = vld [vmem:[%s3273_s4 + $0x8] ss:$16 sps:$4 sm:$0xff]  }
  0x16   :  { %3306 = vst [vmem:[#allocation13_spill] sm:$0xff] %v2637_v57 }
  0x1a   :  { %1899 = vmatmul.mubr.msk.bf16.vlgmr.msra.gmra.mxu1 %vm172_vm0, %v2031_v5  ;;  %1915 = vmatmul.mubr.msk.bf16.vlgmr.msra.gmra.mxu0 %vm172_vm0, %v2047_v19  ;;  %v551_v5 = vlaneseq }
  0x1b   :  { %489 = vmatpush1.bf16.msra.mxu1 %v2048_v20  ;;  %835 = vmatpush1.bf16.msra.mxu0 %v2404_v21 }
  0x1c   :  { %836 = vmatprep.subr.bf16.mxu0 %v2409_v22  ;;  %300 = vmatprep.mubr.bf16.mxu1 %v3278_v1  ;;  %v2670_v10 = vshrl.u32 %v551_v5, 7 }
  0x1d   :  { %445 = vmatprep.mubr.bf16.mxu0 %v3278_v1  ;;  %490 = vmatprep.subr.bf16.mxu1 %v2067_v23 }
  0x1e   :  { %v557_v20 = vsub.s32 1, %v2670_v10 }
  0x1f   :  { %837 = vmatpush1.bf16.msra.mxu0 %v2420_v24  ;;  %491 = vmatpush1.bf16.msra.mxu1 %v2065_v25 }
  0x20   :  { %838 = vmatprep.subr.bf16.mxu0 %v2430_v26  ;;  %875 = vmatprep.subr.bf16.mxu1 %v2439_v28 }
  0x22   :  { %1900 = vmatmul.mubr.msk.bf16.gmra.mxu1 %vm172_vm0, %v2036_v14  ;;  %1916 = vmatmul.mubr.msk.bf16.gmra.mxu0 %vm172_vm0, %v2057_v27 }
  0x23   :  { %839 = vmatpush1.bf16.msra.mxu0 %v2445_v29  ;;  %310 = vmatprep.mubr.bf16.mxu1 %v3278_v1 }
  0x24   :  { %840 = vmatprep.subr.bf16.mxu0 %v2451_v30  ;;  %455 = vmatprep.mubr.bf16.mxu0 %v3278_v1 }
  0x27   :  { %841 = vmatpush1.bf16.msra.mxu0 %v2460_v31 }
  0x28   :  { %842 = vmatprep.subr.bf16.mxu0 %v2468_v32 }
  0x2a   :  { %1901 = vmatmul.mubr.msk.bf16.gmra.mxu1 %vm172_vm0, %v2345_v7  ;;  %1917 = vmatmul.mubr.msk.bf16.gmra.mxu0 %vm172_vm0, %v2064_v33 }
  0x2b   :  { %843 = vmatpush1.bf16.msra.mxu0 %v2477_v34  ;;  %320 = vmatprep.mubr.bf16.mxu1 %v3278_v1 }
  0x2c   :  { %844 = vmatprep.subr.bf16.mxu0 %v2483_v35  ;;  %465 = vmatprep.mubr.bf16.mxu0 %v3278_v1 }
  0x2f   :  { %845 = vmatpush1.bf16.msra.mxu0 %v2492_v36 }
  0x30   :  { %846 = vmatprep.subr.bf16.mxu0 %v2500_v37 }
  0x32   :  { %1902 = vmatmul.mubr.msk.bf16.gmra.mxu1 %vm172_vm0, %v2376_v15  ;;  %1918 = vmatmul.mubr.msk.bf16.gmra.mxu0 %vm172_vm0, %v2074_v38  ;;  %v553_v15 = vsub.s32 0, %v2670_v10 }
  0x33   :  { %847 = vmatpush1.bf16.msra.mxu0 %v2509_v39  ;;  %508 = vmatprep.mubr.bf16.mxu1 %v3278_v1 }
  0x34   :  { %848 = vmatprep.subr.bf16.mxu0 %v2515_v40  ;;  %866 = vmatprep.mubr.bf16.mxu0 %v3278_v1 }
  0x37   :  { %849 = vmatpush1.bf16.msra.mxu0 %v2524_v41 }
  0x38   :  { %949 = vmatprep.subr.bf16.mxu0 %v2387_v18 }
  0x3a   :  { %1919 = vmatmul.mubr.msk.bf16.vlgmr.msra.gmra.mxu1 %vm172_vm0, %v2047_v19  ;;  %867 = vmatmul.mubr.bf16.vlgmr.msra.gmra.mxu0 %v2274_v44  ;;  %v2686_v19 = vld [vmem:[%s3274_s5] sm:$0xf] }
  0x3b   :  { %876 = vmatpush1.bf16.msra.mxu1 %v2533_v42  ;;  %518 = vmatprep.mubr.bf16.mxu1 %v3278_v1 }
  0x3c   :  { %877 = vmatprep.subr.bf16.mxu1 %v2538_v43  ;;  %950 = vmatpush1.bf16.msra.mxu0 %v2404_v21 }
  0x3d   :  { %951 = vmatprep.subr.bf16.mxu0 %v2409_v22  ;;  %981 = vmatprep.mubr.bf16.mxu0 %v3278_v1 }
  0x3f   :  { %878 = vmatpush1.bf16.msra.mxu1 %v2546_v45 }
  0x40   :  { %879 = vmatprep.subr.bf16.mxu1 %v2553_v46  ;;  %952 = vmatpush1.bf16.msra.mxu0 %v2420_v24 }
  0x41   :  { %953 = vmatprep.subr.bf16.mxu0 %v2430_v26 }
  0x42   :  { %1920 = vmatmul.mubr.msk.bf16.gmra.mxu1 %vm172_vm0, %v2057_v27 }
  0x43   :  { %880 = vmatpush1.bf16.msra.mxu1 %v2562_v47  ;;  %528 = vmatprep.mubr.bf16.mxu1 %v3278_v1 }
  0x44   :  { %881 = vmatprep.subr.bf16.mxu1 %v2568_v48  ;;  %954 = vmatpush1.bf16.msra.mxu0 %v2445_v29 }
  0x45   :  { %955 = vmatprep.subr.bf16.mxu0 %v2451_v30 }
  0x47   :  { %882 = vmatpush1.bf16.msra.mxu1 %v2577_v49 }
  0x48   :  { %883 = vmatprep.subr.bf16.mxu1 %v2584_v50  ;;  %956 = vmatpush1.bf16.msra.mxu0 %v2460_v31 }
  0x49   :  { %957 = vmatprep.subr.bf16.mxu0 %v2468_v32 }
  0x4a   :  { %1921 = vmatmul.mubr.msk.bf16.gmra.mxu1 %vm172_vm0, %v2064_v33  ;;  %v2692_v33 = vrot.slane %v2686_v19, %v553_v15 }
  0x4b   :  { %884 = vmatpush1.bf16.msra.mxu1 %v2592_v51  ;;  %538 = vmatprep.mubr.bf16.mxu1 %v3278_v1 }
  0x4c   :  { %885 = vmatprep.subr.bf16.mxu1 %v2598_v52  ;;  %958 = vmatpush1.bf16.msra.mxu0 %v2477_v34 }
  0x4d   :  { %959 = vmatprep.subr.bf16.mxu0 %v2483_v35 }
  0x4f   :  { %886 = vmatpush1.bf16.msra.mxu1 %v2607_v53 }
  0x50   :  { %887 = vmatprep.subr.bf16.mxu1 %v2614_v54  ;;  %960 = vmatpush1.bf16.msra.mxu0 %v2492_v36 }
  0x51   :  { %961 = vmatprep.subr.bf16.mxu0 %v2500_v37 }
  0x52   :  { %1922 = vmatmul.mubr.msk.bf16.gmra.mxu1 %vm172_vm0, %v2074_v38 }
  0x53   :  { %888 = vmatpush1.bf16.msra.mxu1 %v2622_v55  ;;  %907 = vmatprep.mubr.bf16.mxu1 %v3278_v1 }
  0x54   :  { %889 = vmatprep.subr.bf16.mxu1 %v2628_v56  ;;  %962 = vmatpush1.bf16.msra.mxu0 %v2509_v39 }
  0x55   :  { %963 = vmatprep.subr.bf16.mxu0 %v2515_v40 }
  0x57   :  { %890 = vmatpush1.bf16.msra.mxu1 %v2637_v57 }
  0x58   :  { %990 = vmatprep.subr.bf16.mxu1 %v2439_v28  ;;  %964 = vmatpush1.bf16.msra.mxu0 %v2524_v41 }
  0x59   :  { %1064 = vmatprep.subr.bf16.mxu0 %v2387_v18 }
  0x5a   :  { %908 = vmatmul.mubr.bf16.vlgmr.msra.gmra.mxu1 %v2274_v44 }
  0x5b   :  { %991 = vmatpush1.bf16.msra.mxu1 %v2533_v42  ;;  %1022 = vmatprep.mubr.bf16.mxu1 %v3278_v1  ;;  %v2697_v1 = vrot.slane %v2686_v19, %v557_v20 }
  0x5c   :  { %992 = vmatprep.subr.bf16.mxu1 %v2538_v43 }
  0x5f   :  { %993 = vmatpush1.bf16.msra.mxu1 %v2546_v45 }
  0x60   :  { %994 = vmatprep.subr.bf16.mxu1 %v2553_v46 }
  0x63   :  { %995 = vmatpush1.bf16.msra.mxu1 %v2562_v47 }
  0x64   :  { %996 = vmatprep.subr.bf16.mxu1 %v2568_v48 }
  0x67   :  { %997 = vmatpush1.bf16.msra.mxu1 %v2577_v49 }
  0x68   :  { %998 = vmatprep.subr.bf16.mxu1 %v2584_v50 }
  0x6b   :  { %999 = vmatpush1.bf16.msra.mxu1 %v2592_v51 }
  0x6c   :  { %1000 = vmatprep.subr.bf16.mxu1 %v2598_v52 }
  0x6f   :  { %1001 = vmatpush1.bf16.msra.mxu1 %v2607_v53 }
  0x70   :  { %1002 = vmatprep.subr.bf16.mxu1 %v2614_v54 }
  0x73   :  { %1003 = vmatpush1.bf16.msra.mxu1 %v2622_v55 }
  0x74   :  { %1004 = vmatprep.subr.bf16.mxu1 %v2628_v56 }
  0x77   :  { %1005 = vmatpush1.bf16.msra.mxu1 %v2637_v57 }
  0x78   :  { %1105 = vmatprep.subr.bf16.mxu1 %v2439_v28 }
  0xca   :  { %v2664_v58 = vpop.f32.mrf.mxu0  ;;  %v239_v59 = vpop.f32.mrf.mxu1 }
  0xcc   :  { %v2666_v60 = vpop.f32.mrf.mxu0  ;;  %v241_v61 = vpop.f32.mrf.mxu1 }
  0xce   :  { %v223_v62 = vpop.f32.mrf.mxu0  ;;  %v243_v63 = vpop.f32.mrf.mxu1 }
  0xd0   :  { %v225_v0 = vpop.f32.mrf.mxu0  ;;  %v245_v2 = vpop.f32.mrf.mxu1 }
  0xd2   :  { %v229_v3 = vpop.f32.mrf.mxu0  ;;  %v249_v4 = vpop.f32.mrf.mxu1 }
  0xd4   :  { %v231_v6 = vpop.f32.mrf.mxu0  ;;  %v251_v7 = vpop.f32.mrf.mxu1 }
  0xd6   :  { %v233_v8 = vpop.f32.mrf.mxu0  ;;  %v2668_v9 = vpop.f32.mrf.mxu1 }
  0xd8   :  { %v235_v11 = vpop.f32.mrf.mxu0  ;;  %v2672_v12 = vpop.f32.mrf.mxu1 }
  0xda   :  { %v2674_v13 = vpop.f32.mrf.mxu1  ;;  %v2676_v14 = vpop.f32.mrf.mxu0 }
  0xdc   :  { %v2679_v16 = vpop.f32.mrf.mxu1  ;;  %v2681_v17 = vpop.f32.mrf.mxu0 }
  0xde   :  { %v2689_v23 = vpop.f32.mrf.mxu1  ;;  %v441_v25 = vpop.f32.mrf.mxu0 }
  0xdf   :  { %v442_v27 = vadd.f32 %v441_v25, %v223_v62 }
  0xe0   :  { %v2694_v38 = vpop.f32.mrf.mxu1  ;;  %v443_v44 = vpop.f32.mrf.mxu0 }
  0xe1   :  { %v444_v5 = vadd.f32 %v443_v44, %v225_v0  ;;  %v2700_v28 = vadd.f32 %v2692_v33, %v442_v27 }
  0xe2   :  { %v2702_v18 = vpop.f32.mrf.mxu1  ;;  %v447_v57 = vpop.f32.mrf.mxu0 }
  0xe3   :  { %3307 = vst [vmem:[#allocation14_spill] sm:$0xff] %v2700_v28  ;;  %v448_v41 = vadd.f32 %v447_v57, %v229_v3  ;;  %v2705_v56 = vadd.f32 %v2697_v1, %v444_v5 }
  0xe4   :  { %v2707_v62 = vpop.f32.mrf.mxu1  ;;  %v449_v15 = vpop.f32.mrf.mxu0 }
  0xe5   :  { %3308 = vst [vmem:[#allocation15_spill] sm:$0xff] %v2705_v56  ;;  %v450_v25 = vadd.f32 %v449_v15, %v231_v6  ;;  %v2710_v40 = vadd.f32 %v2692_v33, %v448_v41 }
  0xe6   :  { %v2712_v0 = vpop.f32.mrf.mxu1  ;;  %v451_v20 = vpop.f32.mrf.mxu0 }
  0xe7   :  { %3309 = vst [vmem:[#allocation16_spill] sm:$0xff] %v2710_v40  ;;  %v452_v44 = vadd.f32 %v451_v20, %v233_v8  ;;  %v2715_v27 = vadd.f32 %v2697_v1, %v450_v25 }
  0xe8   :  { %v2717_v28 = vpop.f32.mrf.mxu1  ;;  %v453_v57 = vpop.f32.mrf.mxu0 }
  0xe9   :  { %3310 = vst [vmem:[#allocation17_spill] sm:$0xff] %v2715_v27  ;;  %v454_v3 = vadd.f32 %v453_v57, %v235_v11  ;;  %v2720_v5 = vadd.f32 %v2692_v33, %v452_v44 }
  0xea   :  { %v2722_v56 = vpop.f32.mrf.mxu1  ;;  %v457_v6 = vpop.f32.mrf.mxu0 }
  0xeb   :  { %3311 = vst [vmem:[#allocation18_spill] sm:$0xff] %v2720_v5  ;;  %v458_v15 = vadd.f32 %v457_v6, %v239_v59  ;;  %v2725_v41 = vadd.f32 %v2697_v1, %v454_v3 }
  0xec   :  { %v2727_v40 = vpop.f32.mrf.mxu1  ;;  %v459_v8 = vpop.f32.mrf.mxu0 }
  0xed   :  { %3312 = vst [vmem:[#allocation19_spill] sm:$0xff] %v2725_v41  ;;  %v460_v20 = vadd.f32 %v459_v8, %v241_v61  ;;  %v2730_v25 = vadd.f32 %v2692_v33, %v458_v15 }
  0xee   :  { %v2732_v27 = vpop.f32.mrf.mxu1  ;;  %v461_v11 = vpop.f32.mrf.mxu0 }
  0xef   :  { %3313 = vst [vmem:[#allocation20_spill] sm:$0xff] %v2730_v25  ;;  %v462_v57 = vadd.f32 %v461_v11, %v243_v63  ;;  %v2735_v44 = vadd.f32 %v2697_v1, %v460_v20 }
  0xf0   :  { %v2737_v5 = vpop.f32.mrf.mxu1  ;;  %v463_v59 = vpop.f32.mrf.mxu0 }
  0xf1   :  { %3314 = vst [vmem:[#allocation21_spill] sm:$0xff] %v2735_v44  ;;  %v464_v6 = vadd.f32 %v463_v59, %v245_v2  ;;  %v2740_v3 = vadd.f32 %v2692_v33, %v462_v57 }
  0xf2   :  { %v2742_v41 = vpop.f32.mrf.mxu1  ;;  %v467_v61 = vpop.f32.mrf.mxu0 }
  0xf3   :  { %3315 = vst [vmem:[#allocation22_spill] sm:$0xff] %v2740_v3  ;;  %v468_v8 = vadd.f32 %v467_v61, %v249_v4  ;;  %v2745_v15 = vadd.f32 %v2697_v1, %v464_v6 }
  0xf4   :  { %v2747_v25 = vpop.f32.mrf.mxu1  ;;  %v469_v63 = vpop.f32.mrf.mxu0 }
  0xf5   :  { %3316 = vst [vmem:[#allocation23_spill] sm:$0xff] %v2745_v15  ;;  %v470_v11 = vadd.f32 %v469_v63, %v251_v7  ;;  %v2750_v20 = vadd.f32 %v2692_v33, %v468_v8  ;;  %v438_v8 = vadd.f32 %v2676_v14, %v2664_v58 }
  0xf6   :  { %v2752_v44 = vpop.f32.mrf.mxu1  ;;  %v471_v2 = vpop.f32.mrf.mxu0 }
  0xf7   :  { %3317 = vst [vmem:[#allocation24_spill] sm:$0xff] %v2750_v20  ;;  %v472_v57 = vadd.f32 %v471_v2, %v2668_v9  ;;  %v2756_v59 = vadd.f32 %v2697_v1, %v470_v11  ;;  %v561_v20 = vsub.s32 2, %v2670_v10  ;;  %v440_v11 = vadd.f32 %v2681_v17, %v2666_v60 }
  0xf8   :  { %v2758_v3 = vpop.f32.mrf.mxu1  ;;  %v473_v4 = vpop.f32.mrf.mxu0 }
  0xf9   :  { %3318 = vst [vmem:[#allocation25_spill] sm:$0xff] %v2756_v59  ;;  %v474_v6 = vadd.f32 %v473_v4, %v2672_v12  ;;  %v2762_v61 = vadd.f32 %v2692_v33, %v472_v57  ;;  %v565_v12 = vsub.s32 3, %v2670_v10  ;;  %v562_v58 = vrot.slane %v2686_v19, %v561_v20 }
  0xfa   :  { %v510_v7 = vpop.f32.mrf.mxu1  ;;  %v868_v63 = vpop.f32.mrf.mxu0  ;;  %v572_v14 = vadd.f32 %v2697_v1, %v440_v11 }
  0xfb   :  { %3319 = vst [vmem:[#allocation26_spill] sm:$0xff] %v2762_v61  ;;  %v2768_v9 = vadd.f32 %v2697_v1, %v474_v6  ;;  %v571_v61 = vadd.f32 %v2692_v33, %v438_v8  ;;  %v566_v60 = vrot.slane %v2686_v19, %v565_v12 }
  0xfc   :  { %v512_v2 = vpop.f32.mrf.mxu1  ;;  %v870_v59 = vpop.f32.mrf.mxu0 }
  0xfd   :  { %3320 = vst [vmem:[#allocation27_spill] sm:$0xff] %v2768_v9  ;;  %v916_v9 = vadd.f32 %v868_v63, %v571_v61  ;;  %v917_v10 = vadd.f32 %v870_v59, %v572_v14 }
  0xfe   :  { %v514_v4 = vpop.f32.mrf.mxu1  ;;  %v872_v57 = vpop.f32.mrf.mxu0 }
  0xff   :  { %v515_v15 = vadd.f32 %v514_v4, %v2689_v23  ;;  %v1955_v8 = vmul.f32 -1.442695, %v916_v9  ;;  %v1956_v11 = vmul.f32 -1.442695, %v917_v10 }
 0x100   :  { %v516_v55 = vpop.f32.mrf.mxu1  ;;  %v873_v6 = vpop.f32.mrf.mxu0 }
 0x101   :  { %v517_v39 = vadd.f32 %v516_v55, %v2694_v38  ;;  %v2779_v17 = vadd.f32 %v562_v58, %v515_v15  ;;  %2113 = vpow2.f32 %v1955_v8 }
 0x102   :  { %v520_v54 = vpop.f32.mrf.mxu1  ;;  %2115 = vpow2.f32 %v1956_v11 }
 0x103   :  { %v521_v57 = vadd.f32 %v520_v54, %v2702_v18  ;;  %v2782_v33 = vadd.f32 %v566_v60, %v517_v39 }
 0x104   :  { %v522_v23 = vpop.f32.mrf.mxu1 }
 0x105   :  { %v523_v20 = vadd.f32 %v522_v23, %v2707_v62  ;;  %v2785_v1 = vadd.f32 %v562_v58, %v521_v57 }
 0x106   :  { %v524_v61 = vpop.f32.mrf.mxu1 }
 0x107   :  { %v525_v55 = vadd.f32 %v524_v61, %v2712_v0  ;;  %v2788_v38 = vadd.f32 %v566_v60, %v523_v20 }
 0x108   :  { %v526_v19 = vpop.f32.mrf.mxu1 }
 0x109   :  { %v527_v15 = vadd.f32 %v526_v19, %v2717_v28  ;;  %v2791_v59 = vadd.f32 %v562_v58, %v525_v55  ;;  %v513_v55 = vadd.f32 %v512_v2, %v2679_v16 }
 0x10a   :  { %v530_v18 = vpop.f32.mrf.mxu1 }
 0x10b   :  { %v531_v39 = vadd.f32 %v530_v18, %v2722_v56  ;;  %v2794_v54 = vadd.f32 %v566_v60, %v527_v15 }
 0x10c   :  { %v532_v62 = vpop.f32.mrf.mxu1 }
 0x10d   :  { %v533_v63 = vadd.f32 %v532_v62, %v2727_v40  ;;  %v2797_v9 = vadd.f32 %v562_v58, %v531_v39  ;;  %v511_v40 = vadd.f32 %v510_v7, %v2674_v13 }
 0x10e   :  { %v534_v0 = vpop.f32.mrf.mxu1 }
 0x10f   :  { %v535_v12 = vadd.f32 %v534_v0, %v2732_v27  ;;  %v2800_v4 = vadd.f32 %v566_v60, %v533_v63  ;;  %v2114_v27 = vpop.eup %2113  ;;  %v573_v39 = vadd.f32 %v562_v58, %v511_v40  ;;  %v574_v63 = vadd.f32 %v566_v60, %v513_v55 }
 0x110   :  { %v536_v14 = vpop.f32.mrf.mxu1  ;;  %v2116_v61 = vpop.eup %2115  ;;  %v3324_v55 = vmov 0  }
 0x111   :  { %v537_v28 = vadd.f32 %v536_v14, %v2737_v5  ;;  %v2803_v6 = vadd.f32 %v562_v58, %v535_v12  ;;  %v930_v13 = vadd.f32 1.0, %v2116_v61 }
 0x112   :  { %v540_v10 = vpop.f32.mrf.mxu1 }
 0x113   :  { %v541_v56 = vadd.f32 %v540_v10, %v2742_v41  ;;  %v2806_v57 = vadd.f32 %v566_v60, %v537_v28  ;;  %v929_v41 = vadd.f32 1.0, %v2114_v27 }
 0x114   :  { %v542_v23 = vpop.f32.mrf.mxu1 }
 0x115   :  { %v543_v8 = vadd.f32 %v542_v23, %v2747_v25  ;;  %v2810_v20 = vadd.f32 %v562_v58, %v541_v56  ;;  %2117 = vrcp.f32 %v929_v41  ;;  %v3327_v41 = vld [vmem:[#allocation11_spill] sm:$0xff] }
 0x116   :  { %v544_v11 = vpop.f32.mrf.mxu1  ;;  %2119 = vrcp.f32 %v930_v13  ;;  %v3330_v13 = vld [vmem:[#allocation9_spill] sm:$0xff] }
 0x117   :  { %v545_v5 = vadd.f32 %v544_v11, %v2752_v44  ;;  %v2814_v19 = vadd.f32 %v566_v60, %v543_v8 }
 0x118   :  { %v546_v15 = vpop.f32.mrf.mxu1 }
 0x119   :  { %3321 = vst [vmem:[#allocation28_spill] sm:$0xff] %v2814_v19  ;;  %v547_v18 = vadd.f32 %v546_v15, %v2758_v3  ;;  %v2817_v62 = vadd.f32 %v562_v58, %v545_v5  ;;  %v3325_v5 = vld [vmem:[#allocation10_spill] sm:$0xff]  ;;  %v3326_v15 = vld [vmem:[#allocation7_spill] sm:$0xff] }
 0x11a   :  { %v909_v25 = vpop.f32.mrf.mxu1 }
 0x11b   :  { %3322 = vst [vmem:[#allocation29_spill] sm:$0xff] %v2817_v62  ;;  %v918_v7 = vadd.f32 %v909_v25, %v573_v39  ;;  %v2819_v0 = vadd.f32 %v566_v60, %v547_v18  ;;  %v3328_v18 = vld [vmem:[#allocation8_spill] sm:$0xff]  ;;  %v3331_v25 = vld [vmem:[#allocation13_spill] sm:$0xff] }
 0x11c   :  { %v911_v12 = vpop.f32.mrf.mxu1  ;;  %v3329_v39 = vld [vmem:[#allocation12_spill] sm:$0xff] }
 0x11d   :  { %3323 = vst [vmem:[#allocation30_spill] sm:$0xff] %v2819_v0  ;;  %v1957_v16 = vmul.f32 -1.442695, %v918_v7  ;;  %v919_v2 = vadd.f32 %v911_v12, %v574_v63  ;;  %v3332_v7 = vld [vmem:[#allocation5_spill] sm:$0xff]  ;;  %v3333_v63 = vld [vmem:[#allocation6_spill] sm:$0xff] }
 0x11e   :  { %v913_v44 = vpop.f32.mrf.mxu1 }
 0x11f   :  { %2121 = vpow2.f32 %v1957_v16 }
 0x120   :  { %2123 = vtanh.f32 %v919_v2  ;;  %v914_v14 = vpop.f32.mrf.mxu1  ;;  %v3334_v2 = vld [vmem:[#allocation14_spill] sm:$0xff] }
 0x122   :  { %v2118_v28 = vpop.eup %2117 }
 0x123   :  { %v2120_v3 = vpop.eup %2119 }
 0x124   :  { %v939_v23 = vmul.f32 0.0, %v2120_v3 }
 0x12c   :  { %v2122_v10 = vpop.eup %2121 }
 0x12d   :  { %v2124_v58 = vpop.eup %2123  ;;  %v931_v56 = vadd.f32 1.0, %v2122_v10  ;;  %v3335_v10 = vld [vmem:[#allocation15_spill] sm:$0xff] }
 0x12e   :  { %v940_v40 = vmul.f32 %v2124_v58, %v2118_v28 }
 0x12f   :  { %2125 = vrcp.f32 %v931_v56 }
 0x130   :  { %v2821_v8 = vadd.f32 %v940_v40, %v939_v23 }
 0x132   :  { %2127 = vtanh.f32 %v2821_v8 }
 0x13c   :  { %v2126_v60 = vpop.eup %2125 }
 0x13f   :  { %v2128_v27 = vpop.eup %2127 }
 0x140   :  { %v943_v11 = vmul.f32 %v2128_v27, %v2126_v60 }
 0x142   :  { %v948_v61 = vpack.c.bf16 %v943_v11, %v943_v11 }
 0x144   :  { %982 = vmatmul.mubr.bf16.vlgmr.msra.gmra.mxu0 %v948_v61  ;;  %1023 = vmatmul.mubr.bf16.vlgmr.msra.gmra.mxu1 %v948_v61 }
 0x145   :  { %1065 = vmatpush1.bf16.msra.mxu0 %v2404_v21  ;;  %1106 = vmatpush1.bf16.msra.mxu1 %v2533_v42 }
 0x146   :  { %1066 = vmatprep.subr.bf16.mxu0 %v2409_v22  ;;  %1107 = vmatprep.subr.bf16.mxu1 %v2538_v43 }
 0x147   :  { %1096 = vmatprep.mubr.bf16.mxu0 %v3324_v55  ;;  %1137 = vmatprep.mubr.bf16.mxu1 %v3324_v55 }
 0x149   :  { %1067 = vmatpush1.bf16.msra.mxu0 %v2420_v24  ;;  %1108 = vmatpush1.bf16.msra.mxu1 %v2546_v45 }
 0x14a   :  { %1068 = vmatprep.subr.bf16.mxu0 %v2430_v26  ;;  %1109 = vmatprep.subr.bf16.mxu1 %v2553_v46 }
 0x14d   :  { %1069 = vmatpush1.bf16.msra.mxu0 %v2445_v29  ;;  %1110 = vmatpush1.bf16.msra.mxu1 %v2562_v47 }
 0x14e   :  { %1070 = vmatprep.subr.bf16.mxu0 %v2451_v30  ;;  %1111 = vmatprep.subr.bf16.mxu1 %v2568_v48 }
 0x151   :  { %1071 = vmatpush1.bf16.msra.mxu0 %v2460_v31  ;;  %1112 = vmatpush1.bf16.msra.mxu1 %v2577_v49 }
 0x152   :  { %1072 = vmatprep.subr.bf16.mxu0 %v2468_v32  ;;  %1113 = vmatprep.subr.bf16.mxu1 %v2584_v50 }
 0x155   :  { %1073 = vmatpush1.bf16.msra.mxu0 %v2477_v34  ;;  %1114 = vmatpush1.bf16.msra.mxu1 %v2592_v51 }
 0x156   :  { %1074 = vmatprep.subr.bf16.mxu0 %v2483_v35  ;;  %1115 = vmatprep.subr.bf16.mxu1 %v2598_v52 }
 0x159   :  { %1075 = vmatpush1.bf16.msra.mxu0 %v2492_v36  ;;  %1116 = vmatpush1.bf16.msra.mxu1 %v2607_v53 }
 0x15a   :  { %1076 = vmatprep.subr.bf16.mxu0 %v2500_v37  ;;  %1117 = vmatprep.subr.bf16.mxu1 %v3325_v5 }
 0x15d   :  { %1077 = vmatpush1.bf16.msra.mxu0 %v3326_v15  ;;  %1118 = vmatpush1.bf16.msra.mxu1 %v3327_v41 }
 0x15e   :  { %1078 = vmatprep.subr.bf16.mxu0 %v3328_v18  ;;  %1119 = vmatprep.subr.bf16.mxu1 %v3329_v39 }
 0x161   :  { %1079 = vmatpush1.bf16.msra.mxu0 %v3330_v13  ;;  %1120 = vmatpush1.bf16.msra.mxu1 %v3331_v25 }
 0x162   :  { %1179 = vmatprep.subr.bf16.mxu0 %v3332_v7  ;;  %1220 = vmatprep.subr.bf16.mxu1 %v3333_v63 }
 0x204   :  { %v983_v12 = vpop.f32.mrf.mxu0  ;;  %v1024_v16 = vpop.f32.mrf.mxu1 }
 0x205   :  { %v1031_v44 = vadd.f32 %v983_v12, %v3334_v2  ;;  %v1033_v11 = vadd.f32 %v1024_v16, %v2779_v17 }
 0x206   :  { %v985_v14 = vpop.f32.mrf.mxu0  ;;  %v1026_v28 = vpop.f32.mrf.mxu1 }
 0x207   :  { %v1958_v3 = vmul.f32 -1.442695, %v1031_v44  ;;  %v1032_v58 = vadd.f32 %v985_v14, %v3335_v10  ;;  %v1960_v61 = vmul.f32 -1.442695, %v1033_v11  ;;  %v1034_v0 = vadd.f32 %v1026_v28, %v2782_v33  ;;  %v3336_v28 = vld [vmem:[#allocation16_spill] sm:$0xff] }
 0x208   :  { %v987_v56 = vpop.f32.mrf.mxu0  ;;  %v1028_v23 = vpop.f32.mrf.mxu1 }
 0x209   :  { %2129 = vpow2.f32 %v1958_v3  ;;  %v1959_v40 = vmul.f32 -1.442695, %v1032_v58 }
 0x20a   :  { %v988_v60 = vpop.f32.mrf.mxu0  ;;  %v1029_v27 = vpop.f32.mrf.mxu1 }
 0x20b   :  { %2131 = vpow2.f32 %v1959_v40 }
 0x20c   :  { %2133 = vpow2.f32 %v1960_v61  ;;  %v3337_v61 = vld [vmem:[#allocation17_spill] sm:$0xff] }
 0x20d   :  { %2135 = vtanh.f32 %v1034_v0 }
 0x216   :  { %v2130_v62 = vpop.eup %2129 }
 0x217   :  { %v1044_v19 = vadd.f32 1.0, %v2130_v62 }
 0x218   :  { %v2132_v12 = vpop.eup %2131 }
 0x219   :  { %2137 = vrcp.f32 %v1044_v19  ;;  %v1045_v2 = vadd.f32 1.0, %v2132_v12  ;;  %v2134_v44 = vpop.eup %2133 }
 0x21a   :  { %v2136_v14 = vpop.eup %2135  ;;  %v1046_v56 = vadd.f32 1.0, %v2134_v44 }
 0x21b   :  { %2139 = vrcp.f32 %v1045_v2 }
 0x21c   :  { %2141 = vrcp.f32 %v1046_v56 }
 0x226   :  { %v2138_v3 = vpop.eup %2137 }
 0x227   :  { %v1055_v10 = vmul.f32 %v2138_v3, %v2136_v14 }
 0x228   :  { %v2140_v58 = vpop.eup %2139 }
 0x229   :  { %v1054_v23 = vmul.f32 %v2140_v58, %v2821_v8  ;;  %v2142_v33 = vpop.eup %2141 }
 0x22b   :  { %v2863_v17 = vadd.f32 %v1055_v10, %v1054_v23 }
 0x22d   :  { %2143 = vtanh.f32 %v2863_v17 }
 0x23a   :  { %v2144_v62 = vpop.eup %2143 }
 0x23b   :  { %v1058_v16 = vmul.f32 %v2144_v62, %v2142_v33 }
 0x23d   :  { %v1063_v0 = vpack.c.bf16 %v1058_v16, %v1058_v16 }
 0x23f   :  { %1097 = vmatmul.mubr.bf16.vlgmr.msra.gmra.mxu0 %v1063_v0  ;;  %1138 = vmatmul.mubr.bf16.vlgmr.msra.gmra.mxu1 %v1063_v0 }
 0x240   :  { %1180 = vmatpush1.bf16.msra.mxu0 %v2404_v21  ;;  %1221 = vmatpush1.bf16.msra.mxu1 %v2533_v42 }
 0x241   :  { %1181 = vmatprep.subr.bf16.mxu0 %v2409_v22  ;;  %1222 = vmatprep.subr.bf16.mxu1 %v2538_v43 }
 0x242   :  { %1211 = vmatprep.mubr.bf16.mxu0 %v3324_v55  ;;  %1252 = vmatprep.mubr.bf16.mxu1 %v3324_v55 }
 0x244   :  { %1182 = vmatpush1.bf16.msra.mxu0 %v2420_v24  ;;  %1223 = vmatpush1.bf16.msra.mxu1 %v2546_v45 }
 0x245   :  { %1183 = vmatprep.subr.bf16.mxu0 %v2430_v26  ;;  %1224 = vmatprep.subr.bf16.mxu1 %v2553_v46 }
 0x248   :  { %1184 = vmatpush1.bf16.msra.mxu0 %v2445_v29  ;;  %1225 = vmatpush1.bf16.msra.mxu1 %v2562_v47 }
 0x249   :  { %1185 = vmatprep.subr.bf16.mxu0 %v2451_v30  ;;  %1226 = vmatprep.subr.bf16.mxu1 %v2568_v48 }
 0x24c   :  { %1186 = vmatpush1.bf16.msra.mxu0 %v2460_v31  ;;  %1227 = vmatpush1.bf16.msra.mxu1 %v2577_v49 }
 0x24d   :  { %1187 = vmatprep.subr.bf16.mxu0 %v2468_v32  ;;  %1228 = vmatprep.subr.bf16.mxu1 %v2584_v50 }
 0x250   :  { %1188 = vmatpush1.bf16.msra.mxu0 %v2477_v34  ;;  %1229 = vmatpush1.bf16.msra.mxu1 %v2592_v51 }
 0x251   :  { %1189 = vmatprep.subr.bf16.mxu0 %v2483_v35  ;;  %1230 = vmatprep.subr.bf16.mxu1 %v2598_v52 }
 0x254   :  { %1190 = vmatpush1.bf16.msra.mxu0 %v2492_v36  ;;  %1231 = vmatpush1.bf16.msra.mxu1 %v2607_v53 }
 0x255   :  { %1191 = vmatprep.subr.bf16.mxu0 %v2500_v37  ;;  %1232 = vmatprep.subr.bf16.mxu1 %v3325_v5 }
 0x258   :  { %1192 = vmatpush1.bf16.msra.mxu0 %v3326_v15  ;;  %1233 = vmatpush1.bf16.msra.mxu1 %v3327_v41 }
 0x259   :  { %1193 = vmatprep.subr.bf16.mxu0 %v3328_v18  ;;  %1234 = vmatprep.subr.bf16.mxu1 %v3329_v39 }
 0x25c   :  { %1194 = vmatpush1.bf16.msra.mxu0 %v3330_v13  ;;  %1235 = vmatpush1.bf16.msra.mxu1 %v3331_v25 }
 0x25d   :  { %1294 = vmatprep.subr.bf16.mxu0 %v3332_v7  ;;  %1335 = vmatprep.subr.bf16.mxu1 %v3333_v63 }
 0x2ff   :  { %v1098_v19 = vpop.f32.mrf.mxu0  ;;  %v1139_v8 = vpop.f32.mrf.mxu1 }
 0x300   :  { %v1146_v40 = vadd.f32 %v1098_v19, %v3336_v28  ;;  %v1148_v7 = vadd.f32 %v1139_v8, %v2785_v1 }
 0x301   :  { %v1100_v60 = vpop.f32.mrf.mxu0  ;;  %v1141_v27 = vpop.f32.mrf.mxu1 }
 0x302   :  { %v1961_v11 = vmul.f32 -1.442695, %v1146_v40  ;;  %v1147_v12 = vadd.f32 %v1100_v60, %v3337_v61  ;;  %v1963_v58 = vmul.f32 -1.442695, %v1148_v7  ;;  %v1149_v56 = vadd.f32 %v1141_v27, %v2788_v38 }
 0x303   :  { %v1102_v2 = vpop.f32.mrf.mxu0  ;;  %v1143_v44 = vpop.f32.mrf.mxu1 }
 0x304   :  { %2145 = vpow2.f32 %v1961_v11  ;;  %v1962_v14 = vmul.f32 -1.442695, %v1147_v12 }
 0x305   :  { %v1103_v3 = vpop.f32.mrf.mxu0  ;;  %v1144_v10 = vpop.f32.mrf.mxu1 }
 0x306   :  { %2147 = vpow2.f32 %v1962_v14 }
 0x307   :  { %2149 = vpow2.f32 %v1963_v58 }
 0x308   :  { %2151 = vtanh.f32 %v1149_v56 }
 0x311   :  { %v2146_v23 = vpop.eup %2145 }
 0x312   :  { %v1159_v33 = vadd.f32 1.0, %v2146_v23 }
 0x313   :  { %v2148_v62 = vpop.eup %2147 }
 0x314   :  { %2153 = vrcp.f32 %v1159_v33  ;;  %v1160_v16 = vadd.f32 1.0, %v2148_v62  ;;  %v2150_v0 = vpop.eup %2149 }
 0x315   :  { %v2152_v19 = vpop.eup %2151  ;;  %v1161_v11 = vadd.f32 1.0, %v2150_v0 }
 0x316   :  { %2155 = vrcp.f32 %v1160_v16 }
 0x317   :  { %2157 = vrcp.f32 %v1161_v11  ;;  %v2974_v11 = vld [vmem:[%s3273_s4 + $0xc0] ss:$16 sps:$4 sm:$0xff]  }
 0x321   :  { %v2154_v28 = vpop.eup %2153 }
 0x322   :  { %v1170_v40 = vmul.f32 %v2154_v28, %v2152_v19 }
 0x323   :  { %v2156_v60 = vpop.eup %2155 }
 0x324   :  { %v1169_v61 = vmul.f32 %v2156_v60, %v2863_v17  ;;  %v2158_v38 = vpop.eup %2157  ;;  %v2965_v60 = vld [vmem:[%s3273_s4 + $0xc4] ss:$16 sps:$4 sm:$0xff]  }
 0x326   :  { %v2905_v1 = vadd.f32 %v1170_v40, %v1169_v61  ;;  %v2958_v40 = vld [vmem:[%s3273_s4 + $0xe0] ss:$16 sps:$4 sm:$0xff]  }
 0x328   :  { %2159 = vtanh.f32 %v2905_v1 }
 0x335   :  { %v2160_v8 = vpop.eup %2159 }
 0x336   :  { %v1173_v27 = vmul.f32 %v2160_v8, %v2158_v38 }
 0x338   :  { %v1178_v12 = vpack.c.bf16 %v1173_v27, %v1173_v27 }
 0x33a   :  { %1212 = vmatmul.mubr.bf16.vlgmr.msra.gmra.mxu0 %v1178_v12  ;;  %1253 = vmatmul.mubr.bf16.vlgmr.msra.gmra.mxu1 %v1178_v12 }
 0x33b   :  { %1295 = vmatpush1.bf16.msra.mxu0 %v2404_v21  ;;  %1336 = vmatpush1.bf16.msra.mxu1 %v2533_v42  ;;  %v2943_v21 = vld [vmem:[%s3273_s4 + $0xe4] ss:$16 sps:$4 sm:$0xff]  }
 0x33c   :  { %1296 = vmatprep.subr.bf16.mxu0 %v2409_v22  ;;  %1337 = vmatprep.subr.bf16.mxu1 %v2538_v43 }
 0x33d   :  { %1326 = vmatprep.mubr.bf16.mxu0 %v3324_v55  ;;  %1367 = vmatprep.mubr.bf16.mxu1 %v3324_v55 }
 0x33f   :  { %1297 = vmatpush1.bf16.msra.mxu0 %v2420_v24  ;;  %1338 = vmatpush1.bf16.msra.mxu1 %v2546_v45 }
 0x340   :  { %1298 = vmatprep.subr.bf16.mxu0 %v2430_v26  ;;  %1339 = vmatprep.subr.bf16.mxu1 %v2553_v46  ;;  %v3338_v26 = vld [vmem:[#allocation18_spill] sm:$0xff] }
 0x343   :  { %1299 = vmatpush1.bf16.msra.mxu0 %v2445_v29  ;;  %1340 = vmatpush1.bf16.msra.mxu1 %v2562_v47 }
 0x344   :  { %1300 = vmatprep.subr.bf16.mxu0 %v2451_v30  ;;  %1341 = vmatprep.subr.bf16.mxu1 %v2568_v48 }
 0x347   :  { %1301 = vmatpush1.bf16.msra.mxu0 %v2460_v31  ;;  %1342 = vmatpush1.bf16.msra.mxu1 %v2577_v49 }
 0x348   :  { %1302 = vmatprep.subr.bf16.mxu0 %v2468_v32  ;;  %1343 = vmatprep.subr.bf16.mxu1 %v2584_v50 }
 0x34b   :  { %1303 = vmatpush1.bf16.msra.mxu0 %v2477_v34  ;;  %1344 = vmatpush1.bf16.msra.mxu1 %v2592_v51  ;;  %v3339_v34 = vld [vmem:[#allocation19_spill] sm:$0xff] }
 0x34c   :  { %1304 = vmatprep.subr.bf16.mxu0 %v2483_v35  ;;  %1345 = vmatprep.subr.bf16.mxu1 %v2598_v52 }
 0x34f   :  { %1305 = vmatpush1.bf16.msra.mxu0 %v2492_v36  ;;  %1346 = vmatpush1.bf16.msra.mxu1 %v2607_v53 }
 0x350   :  { %1306 = vmatprep.subr.bf16.mxu0 %v2500_v37  ;;  %1347 = vmatprep.subr.bf16.mxu1 %v3325_v5 }
 0x353   :  { %1307 = vmatpush1.bf16.msra.mxu0 %v3326_v15  ;;  %1348 = vmatpush1.bf16.msra.mxu1 %v3327_v41 }
 0x354   :  { %1308 = vmatprep.subr.bf16.mxu0 %v3328_v18  ;;  %1349 = vmatprep.subr.bf16.mxu1 %v3329_v39 }
 0x357   :  { %1309 = vmatpush1.bf16.msra.mxu0 %v3330_v13  ;;  %1350 = vmatpush1.bf16.msra.mxu1 %v3331_v25 }
 0x358   :  { %1409 = vmatprep.subr.bf16.mxu0 %v2943_v21  ;;  %1450 = vmatprep.subr.bf16.mxu1 %v3333_v63 }
 0x3fa   :  { %v1213_v22 = vpop.f32.mrf.mxu0  ;;  %v1254_v24 = vpop.f32.mrf.mxu1 }
 0x3fb   :  { %v1261_v29 = vadd.f32 %v1213_v22, %v3338_v26  ;;  %v1263_v17 = vadd.f32 %v1254_v24, %v2791_v59  ;;  %v3341_v22 = vld [vmem:[#allocation21_spill] sm:$0xff] }
 0x3fc   :  { %v1215_v30 = vpop.f32.mrf.mxu0  ;;  %v1256_v31 = vpop.f32.mrf.mxu1 }
 0x3fd   :  { %v1964_v32 = vmul.f32 -1.442695, %v1261_v29  ;;  %v1262_v35 = vadd.f32 %v1215_v30, %v3339_v34  ;;  %v1966_v2 = vmul.f32 -1.442695, %v1263_v17  ;;  %v1264_v63 = vadd.f32 %v1256_v31, %v2794_v54 }
 0x3fe   :  { %v1217_v36 = vpop.f32.mrf.mxu0  ;;  %v1258_v37 = vpop.f32.mrf.mxu1 }
 0x3ff   :  { %2161 = vpow2.f32 %v1964_v32  ;;  %v1965_v15 = vmul.f32 -1.442695, %v1262_v35 }
 0x400   :  { %v1218_v18 = vpop.f32.mrf.mxu0  ;;  %v1259_v13 = vpop.f32.mrf.mxu1 }
 0x401   :  { %2163 = vpow2.f32 %v1965_v15 }
 0x402   :  { %2165 = vpow2.f32 %v1966_v2 }
 0x403   :  { %2167 = vtanh.f32 %v1264_v63 }
 0x40c   :  { %v2162_v44 = vpop.eup %2161 }
 0x40d   :  { %v1274_v14 = vadd.f32 1.0, %v2162_v44 }
 0x40e   :  { %v2164_v3 = vpop.eup %2163 }
 0x40f   :  { %2169 = vrcp.f32 %v1274_v14  ;;  %v1275_v10 = vadd.f32 1.0, %v2164_v3  ;;  %v2166_v7 = vpop.eup %2165 }
 0x410   :  { %v2168_v58 = vpop.eup %2167  ;;  %v1276_v62 = vadd.f32 1.0, %v2166_v7 }
 0x411   :  { %2171 = vrcp.f32 %v1275_v10 }
 0x412   :  { %2173 = vrcp.f32 %v1276_v62  ;;  %v3104_v62 = vld [vmem:[%s3273_s4 + $0xac] ss:$16 sps:$4 sm:$0xff]  }
 0x41c   :  { %v2170_v56 = vpop.eup %2169 }
 0x41d   :  { %v1285_v23 = vmul.f32 %v2170_v56, %v2168_v58  ;;  %v3081_v56 = vld [vmem:[%s3273_s4 + $0xe8] ss:$16 sps:$4 sm:$0xff]  }
 0x41e   :  { %v2172_v33 = vpop.eup %2171 }
 0x41f   :  { %v1284_v16 = vmul.f32 %v2172_v33, %v2905_v1  ;;  %v2174_v54 = vpop.eup %2173  ;;  %v3340_v1 = vld [vmem:[#allocation20_spill] sm:$0xff] }
 0x420   :  { %v3097_v33 = vld [vmem:[%s3273_s4 + $0xc8] ss:$16 sps:$4 sm:$0xff]  }
 0x421   :  { %v2952_v59 = vadd.f32 %v1285_v23, %v1284_v16  ;;  %v3088_v23 = vld [vmem:[%s3273_s4 + $0xcc] ss:$16 sps:$4 sm:$0xff]   ;;  %v3111_v16 = vld [vmem:[%s3273_s4 + $0xa8] ss:$16 sps:$4 sm:$0xff]  }
 0x423   :  { %2175 = vtanh.f32 %v2952_v59 }
 0x430   :  { %v2176_v0 = vpop.eup %2175 }
 0x431   :  { %v1288_v19 = vmul.f32 %v2176_v0, %v2174_v54  ;;  %v3125_v54 = vld [vmem:[%s3273_s4 + $0x88] ss:$16 sps:$4 sm:$0xff]   ;;  %v3132_v0 = vld [vmem:[%s3273_s4 + $0x6c] ss:$16 sps:$4 sm:$0xff]  }
 0x433   :  { %v1293_v28 = vpack.c.bf16 %v1288_v19, %v1288_v19  ;;  %v3139_v19 = vld [vmem:[%s3273_s4 + $0x68] ss:$16 sps:$4 sm:$0xff]  }
 0x435   :  { %1327 = vmatmul.mubr.bf16.vlgmr.msra.gmra.mxu0 %v1293_v28  ;;  %1368 = vmatmul.mubr.bf16.vlgmr.msra.gmra.mxu1 %v1293_v28  ;;  %v3146_v28 = vld [vmem:[%s3273_s4 + $0x4c] ss:$16 sps:$4 sm:$0xff]  }
 0x436   :  { %1410 = vmatpush1.bf16.msra.mxu0 %v2958_v40  ;;  %1451 = vmatpush1.bf16.msra.mxu1 %v2533_v42  ;;  %v2981_v42 = vld [vmem:[%s3273_s4 + $0xa4] ss:$16 sps:$4 sm:$0xff]  }
 0x437   :  { %1411 = vmatprep.subr.bf16.mxu0 %v2965_v60  ;;  %1452 = vmatprep.subr.bf16.mxu1 %v2538_v43  ;;  %v2988_v43 = vld [vmem:[%s3273_s4 + $0xa0] ss:$16 sps:$4 sm:$0xff]  }
 0x438   :  { %1441 = vmatprep.mubr.bf16.mxu0 %v3324_v55  ;;  %1482 = vmatprep.mubr.bf16.mxu1 %v3324_v55 }
 0x43a   :  { %1412 = vmatpush1.bf16.msra.mxu0 %v2974_v11  ;;  %1453 = vmatpush1.bf16.msra.mxu1 %v2546_v45  ;;  %v2995_v45 = vld [vmem:[%s3273_s4 + $0x84] ss:$16 sps:$4 sm:$0xff]  }
 0x43b   :  { %1413 = vmatprep.subr.bf16.mxu0 %v2981_v42  ;;  %1454 = vmatprep.subr.bf16.mxu1 %v2553_v46  ;;  %v3002_v46 = vld [vmem:[%s3273_s4 + $0x80] ss:$16 sps:$4 sm:$0xff]  }
 0x43e   :  { %1414 = vmatpush1.bf16.msra.mxu0 %v2988_v43  ;;  %1455 = vmatpush1.bf16.msra.mxu1 %v2562_v47  ;;  %v3009_v47 = vld [vmem:[%s3273_s4 + $0x64] ss:$16 sps:$4 sm:$0xff]  }
 0x43f   :  { %1415 = vmatprep.subr.bf16.mxu0 %v2995_v45  ;;  %1456 = vmatprep.subr.bf16.mxu1 %v2568_v48  ;;  %v3016_v48 = vld [vmem:[%s3273_s4 + $0x60] ss:$16 sps:$4 sm:$0xff]  }
 0x442   :  { %1416 = vmatpush1.bf16.msra.mxu0 %v3002_v46  ;;  %1457 = vmatpush1.bf16.msra.mxu1 %v2577_v49  ;;  %v3023_v49 = vld [vmem:[%s3273_s4 + $0x44] ss:$16 sps:$4 sm:$0xff]  }
 0x443   :  { %1417 = vmatprep.subr.bf16.mxu0 %v3009_v47  ;;  %1458 = vmatprep.subr.bf16.mxu1 %v2584_v50  ;;  %v3030_v50 = vld [vmem:[%s3273_s4 + $0x40] ss:$16 sps:$4 sm:$0xff]  }
 0x446   :  { %1418 = vmatpush1.bf16.msra.mxu0 %v3016_v48  ;;  %1459 = vmatpush1.bf16.msra.mxu1 %v2592_v51  ;;  %v3037_v51 = vld [vmem:[%s3273_s4 + $0x24] ss:$16 sps:$4 sm:$0xff]  }
 0x447   :  { %1419 = vmatprep.subr.bf16.mxu0 %v3023_v49  ;;  %1460 = vmatprep.subr.bf16.mxu1 %v2598_v52  ;;  %v3044_v52 = vld [vmem:[%s3273_s4 + $0x20] ss:$16 sps:$4 sm:$0xff]  }
 0x44a   :  { %1420 = vmatpush1.bf16.msra.mxu0 %v3030_v50  ;;  %1461 = vmatpush1.bf16.msra.mxu1 %v2607_v53  ;;  %v3051_v53 = vld [vmem:[%s3273_s4 + $0x4] ss:$16 sps:$4 sm:$0xff]  }
 0x44b   :  { %1421 = vmatprep.subr.bf16.mxu0 %v3037_v51  ;;  %1462 = vmatprep.subr.bf16.mxu1 %v3325_v5  ;;  %v3058_v5 = vld [vmem:[%s3273_s4] ss:$16 sps:$4 sm:$0xff]  }
 0x44e   :  { %1422 = vmatpush1.bf16.msra.mxu0 %v3044_v52  ;;  %1463 = vmatpush1.bf16.msra.mxu1 %v3327_v41  ;;  %v3066_v41 = vld [vmem:[%s3273_s4 + $0xec] ss:$16 sps:$4 sm:$0xff]  }
 0x44f   :  { %1423 = vmatprep.subr.bf16.mxu0 %v3051_v53  ;;  %1464 = vmatprep.subr.bf16.mxu1 %v3329_v39 }
 0x452   :  { %1424 = vmatpush1.bf16.msra.mxu0 %v3058_v5  ;;  %1465 = vmatpush1.bf16.msra.mxu1 %v3331_v25 }
 0x453   :  { %1524 = vmatprep.subr.bf16.mxu0 %v2943_v21  ;;  %1565 = vmatprep.subr.bf16.mxu1 %v3066_v41 }
 0x4f5   :  { %v1328_v61 = vpop.f32.mrf.mxu0  ;;  %v1369_v39 = vpop.f32.mrf.mxu1 }
 0x4f6   :  { %v1376_v38 = vadd.f32 %v1328_v61, %v3340_v1  ;;  %v1378_v32 = vadd.f32 %v1369_v39, %v2797_v9  ;;  %v3153_v61 = vld [vmem:[%s3273_s4 + $0x48] ss:$16 sps:$4 sm:$0xff]   ;;  %v3160_v39 = vld [vmem:[%s3273_s4 + $0x2c] ss:$16 sps:$4 sm:$0xff]  }
 0x4f7   :  { %v1330_v8 = vpop.f32.mrf.mxu0  ;;  %v1371_v27 = vpop.f32.mrf.mxu1  ;;  %v3167_v1 = vld [vmem:[%s3273_s4 + $0x28] ss:$16 sps:$4 sm:$0xff]  }
 0x4f8   :  { %v1967_v12 = vmul.f32 -1.442695, %v1376_v38  ;;  %v1377_v24 = vadd.f32 %v1330_v8, %v3341_v22  ;;  %v1969_v34 = vmul.f32 -1.442695, %v1378_v32  ;;  %v1379_v35 = vadd.f32 %v1371_v27, %v2800_v4  ;;  %v3174_v38 = vld [vmem:[%s3273_s4 + $0xc] ss:$16 sps:$4 sm:$0xff]  }
 0x4f9   :  { %v1332_v26 = vpop.f32.mrf.mxu0  ;;  %v1373_v25 = vpop.f32.mrf.mxu1  ;;  %v3181_v8 = vld [vmem:[%s3273_s4 + $0x8] ss:$16 sps:$4 sm:$0xff]  }
 0x4fa   :  { %2177 = vpow2.f32 %v1967_v12  ;;  %v1968_v29 = vmul.f32 -1.442695, %v1377_v24  ;;  %v3342_v22 = vld [vmem:[#allocation22_spill] sm:$0xff] }
 0x4fb   :  { %v1333_v30 = vpop.f32.mrf.mxu0  ;;  %v1374_v31 = vpop.f32.mrf.mxu1 }
 0x4fc   :  { %2179 = vpow2.f32 %v1968_v29  ;;  %v3343_v30 = vld [vmem:[#allocation23_spill] sm:$0xff] }
 0x4fd   :  { %2181 = vpow2.f32 %v1969_v34 }
 0x4fe   :  { %2183 = vtanh.f32 %v1379_v35 }
 0x507   :  { %v2178_v36 = vpop.eup %2177 }
 0x508   :  { %v1389_v37 = vadd.f32 1.0, %v2178_v36 }
 0x509   :  { %v2180_v15 = vpop.eup %2179 }
 0x50a   :  { %2185 = vrcp.f32 %v1389_v37  ;;  %v1390_v18 = vadd.f32 1.0, %v2180_v15  ;;  %v2182_v13 = vpop.eup %2181 }
 0x50b   :  { %v2184_v17 = vpop.eup %2183  ;;  %v1391_v14 = vadd.f32 1.0, %v2182_v13 }
 0x50c   :  { %2187 = vrcp.f32 %v1390_v18 }
 0x50d   :  { %2189 = vrcp.f32 %v1391_v14 }
 0x517   :  { %v2186_v2 = vpop.eup %2185 }
 0x518   :  { %v1400_v63 = vmul.f32 %v2186_v2, %v2184_v17 }
 0x519   :  { %v2188_v44 = vpop.eup %2187 }
 0x51a   :  { %v1399_v3 = vmul.f32 %v2188_v44, %v2952_v59  ;;  %v2190_v4 = vpop.eup %2189  ;;  %v3118_v59 = vld [vmem:[%s3273_s4 + $0x8c] ss:$16 sps:$4 sm:$0xff]  }
 0x51c   :  { %v3074_v9 = vadd.f32 %v1400_v63, %v1399_v3 }
 0x51e   :  { %2191 = vtanh.f32 %v3074_v9 }
 0x52b   :  { %v2192_v10 = vpop.eup %2191 }
 0x52c   :  { %v1403_v7 = vmul.f32 %v2192_v10, %v2190_v4 }
 0x52e   :  { %v1408_v58 = vpack.c.bf16 %v1403_v7, %v1403_v7 }
 0x530   :  { %1442 = vmatmul.mubr.bf16.vlgmr.msra.gmra.mxu0 %v1408_v58  ;;  %1483 = vmatmul.mubr.bf16.vlgmr.msra.gmra.mxu1 %v1408_v58 }
 0x531   :  { %1525 = vmatpush1.bf16.msra.mxu0 %v2958_v40  ;;  %1566 = vmatpush1.bf16.msra.mxu1 %v3081_v56 }
 0x532   :  { %1526 = vmatprep.subr.bf16.mxu0 %v2965_v60  ;;  %1567 = vmatprep.subr.bf16.mxu1 %v3088_v23 }
 0x533   :  { %1556 = vmatprep.mubr.bf16.mxu0 %v3324_v55  ;;  %1597 = vmatprep.mubr.bf16.mxu1 %v3324_v55 }
 0x535   :  { %1527 = vmatpush1.bf16.msra.mxu0 %v2974_v11  ;;  %1568 = vmatpush1.bf16.msra.mxu1 %v3097_v33 }
 0x536   :  { %1528 = vmatprep.subr.bf16.mxu0 %v2981_v42  ;;  %1569 = vmatprep.subr.bf16.mxu1 %v3104_v62 }
 0x539   :  { %1529 = vmatpush1.bf16.msra.mxu0 %v2988_v43  ;;  %1570 = vmatpush1.bf16.msra.mxu1 %v3111_v16 }
 0x53a   :  { %1530 = vmatprep.subr.bf16.mxu0 %v2995_v45  ;;  %1571 = vmatprep.subr.bf16.mxu1 %v3118_v59 }
 0x53d   :  { %1531 = vmatpush1.bf16.msra.mxu0 %v3002_v46  ;;  %1572 = vmatpush1.bf16.msra.mxu1 %v3125_v54 }
 0x53e   :  { %1532 = vmatprep.subr.bf16.mxu0 %v3009_v47  ;;  %1573 = vmatprep.subr.bf16.mxu1 %v3132_v0 }
 0x541   :  { %1533 = vmatpush1.bf16.msra.mxu0 %v3016_v48  ;;  %1574 = vmatpush1.bf16.msra.mxu1 %v3139_v19 }
 0x542   :  { %1534 = vmatprep.subr.bf16.mxu0 %v3023_v49  ;;  %1575 = vmatprep.subr.bf16.mxu1 %v3146_v28 }
 0x545   :  { %1535 = vmatpush1.bf16.msra.mxu0 %v3030_v50  ;;  %1576 = vmatpush1.bf16.msra.mxu1 %v3153_v61 }
 0x546   :  { %1536 = vmatprep.subr.bf16.mxu0 %v3037_v51  ;;  %1577 = vmatprep.subr.bf16.mxu1 %v3160_v39 }
 0x549   :  { %1537 = vmatpush1.bf16.msra.mxu0 %v3044_v52  ;;  %1578 = vmatpush1.bf16.msra.mxu1 %v3167_v1 }
 0x54a   :  { %1538 = vmatprep.subr.bf16.mxu0 %v3051_v53  ;;  %1579 = vmatprep.subr.bf16.mxu1 %v3174_v38 }
 0x54d   :  { %1539 = vmatpush1.bf16.msra.mxu0 %v3058_v5  ;;  %1580 = vmatpush1.bf16.msra.mxu1 %v3181_v8 }
 0x54e   :  { %1639 = vmatprep.subr.bf16.mxu0 %v2943_v21  ;;  %1680 = vmatprep.subr.bf16.mxu1 %v3066_v41 }
 0x5f0   :  { %v1443_v27 = vpop.f32.mrf.mxu0  ;;  %v1484_v12 = vpop.f32.mrf.mxu1 }
 0x5f1   :  { %v1491_v24 = vadd.f32 %v1443_v27, %v3342_v22  ;;  %v1493_v21 = vadd.f32 %v1484_v12, %v2803_v6 }
 0x5f2   :  { %v1445_v26 = vpop.f32.mrf.mxu0  ;;  %v1486_v25 = vpop.f32.mrf.mxu1 }
 0x5f3   :  { %v1970_v29 = vmul.f32 -1.442695, %v1491_v24  ;;  %v1492_v31 = vadd.f32 %v1445_v26, %v3343_v30  ;;  %v1972_v15 = vmul.f32 -1.442695, %v1493_v21  ;;  %v1494_v41 = vadd.f32 %v1486_v25, %v2806_v57  ;;  %v2105_v24 = vld [vmem:[%s3275_s6 + $0x38] sm:$0xff]   ;;  %v2106_v25 = vld [vmem:[%s3275_s6 + $0x30] sm:$0xff]  }
 0x5f4   :  { %v1447_v32 = vpop.f32.mrf.mxu0  ;;  %v1488_v34 = vpop.f32.mrf.mxu1  ;;  %v2275_v26 = vmov 0.0   ;;  %v2108_v30 = vld [vmem:[%s3275_s6 + $0x20] sm:$0xff]   ;;  %v3347_v21 = vld [vmem:[#allocation26_spill] sm:$0xff] }
 0x5f5   :  { %2193 = vpow2.f32 %v1970_v29  ;;  %v1971_v35 = vmul.f32 -1.442695, %v1492_v31  ;;  %v2107_v29 = vld [vmem:[%s3275_s6 + $0x28] sm:$0xff]   ;;  %v2109_v31 = vld [vmem:[%s3275_s6 + $0x18] sm:$0xff]   ;;  %v2110_v32 = vld [vmem:[%s3275_s6 + $0x10] sm:$0xff]  }
 0x5f6   :  { %v1448_v36 = vpop.f32.mrf.mxu0  ;;  %v1489_v37 = vpop.f32.mrf.mxu1  ;;  %v2111_v34 = vld [vmem:[%s3275_s6 + $0x8] sm:$0xff]  }
 0x5f7   :  { %2195 = vpow2.f32 %v1971_v35  ;;  %v2112_v35 = vld [vmem:[%s3275_s6] sm:$0xff]  }
 0x5f8   :  { %2197 = vpow2.f32 %v1972_v15 }
 0x5f9   :  { %2199 = vtanh.f32 %v1494_v41 }
 0x602   :  { %v2194_v18 = vpop.eup %2193 }
 0x603   :  { %v1504_v13 = vadd.f32 1.0, %v2194_v18 }
 0x604   :  { %v2196_v17 = vpop.eup %2195 }
 0x605   :  { %2201 = vrcp.f32 %v1504_v13  ;;  %v1505_v2 = vadd.f32 1.0, %v2196_v17  ;;  %v2198_v63 = vpop.eup %2197  ;;  %v3348_v17 = vld [vmem:[#allocation27_spill] sm:$0xff] }
 0x606   :  { %v2200_v44 = vpop.eup %2199  ;;  %v1506_v10 = vadd.f32 1.0, %v2198_v63 }
 0x607   :  { %2203 = vrcp.f32 %v1505_v2 }
 0x608   :  { %2205 = vrcp.f32 %v1506_v10  ;;  %v3349_v10 = vld [vmem:[#allocation29_spill] sm:$0xff] }
 0x612   :  { %v2202_v14 = vpop.eup %2201 }
 0x613   :  { %v1515_v3 = vmul.f32 %v2202_v14, %v2200_v44 }
 0x614   :  { %v2204_v4 = vpop.eup %2203 }
 0x615   :  { %v1514_v7 = vmul.f32 %v2204_v4, %v3074_v9  ;;  %v2206_v57 = vpop.eup %2205  ;;  %v3346_v9 = vld [vmem:[#allocation28_spill] sm:$0xff] }
 0x617   :  { %v3191_v6 = vadd.f32 %v1515_v3, %v1514_v7 }
 0x619   :  { %2207 = vtanh.f32 %v3191_v6 }
 0x626   :  { %v2208_v58 = vpop.eup %2207 }
 0x627   :  { %v1518_v27 = vmul.f32 %v2208_v58, %v2206_v57  ;;  %v3350_v57 = vld [vmem:[#allocation30_spill] sm:$0xff] }
 0x629   :  { %v1523_v12 = vpack.c.bf16 %v1518_v27, %v1518_v27 }
 0x62b   :  { %1557 = vmatmul.mubr.bf16.vlgmr.msra.gmra.mxu0 %v1523_v12  ;;  %1598 = vmatmul.mubr.bf16.vlgmr.msra.gmra.mxu1 %v1523_v12 }
 0x62c   :  { %1640 = vmatpush1.bf16.msra.mxu0 %v2958_v40  ;;  %1681 = vmatpush1.bf16.msra.mxu1 %v3081_v56 }
 0x62d   :  { %1641 = vmatprep.subr.bf16.mxu0 %v2965_v60  ;;  %1682 = vmatprep.subr.bf16.mxu1 %v3088_v23  ;;  %v3344_v60 = vld [vmem:[#allocation24_spill] sm:$0xff] }
 0x62e   :  { %1671 = vmatprep.mubr.bf16.mxu0 %v3324_v55  ;;  %1712 = vmatprep.mubr.bf16.mxu1 %v3324_v55 }
 0x630   :  { %1642 = vmatpush1.bf16.msra.mxu0 %v2974_v11  ;;  %1683 = vmatpush1.bf16.msra.mxu1 %v3097_v33 }
 0x631   :  { %1643 = vmatprep.subr.bf16.mxu0 %v2981_v42  ;;  %1684 = vmatprep.subr.bf16.mxu1 %v3104_v62 }
 0x634   :  { %1644 = vmatpush1.bf16.msra.mxu0 %v2988_v43  ;;  %1685 = vmatpush1.bf16.msra.mxu1 %v3111_v16 }
 0x635   :  { %1645 = vmatprep.subr.bf16.mxu0 %v2995_v45  ;;  %1686 = vmatprep.subr.bf16.mxu1 %v3118_v59 }
 0x638   :  { %1646 = vmatpush1.bf16.msra.mxu0 %v3002_v46  ;;  %1687 = vmatpush1.bf16.msra.mxu1 %v3125_v54  ;;  %v3345_v46 = vld [vmem:[#allocation25_spill] sm:$0xff] }
 0x639   :  { %1647 = vmatprep.subr.bf16.mxu0 %v3009_v47  ;;  %1688 = vmatprep.subr.bf16.mxu1 %v3132_v0 }
 0x63c   :  { %1648 = vmatpush1.bf16.msra.mxu0 %v3016_v48  ;;  %1689 = vmatpush1.bf16.msra.mxu1 %v3139_v19 }
 0x63d   :  { %1649 = vmatprep.subr.bf16.mxu0 %v3023_v49  ;;  %1690 = vmatprep.subr.bf16.mxu1 %v3146_v28 }
 0x640   :  { %1650 = vmatpush1.bf16.msra.mxu0 %v3030_v50  ;;  %1691 = vmatpush1.bf16.msra.mxu1 %v3153_v61 }
 0x641   :  { %1651 = vmatprep.subr.bf16.mxu0 %v3037_v51  ;;  %1692 = vmatprep.subr.bf16.mxu1 %v3160_v39 }
 0x644   :  { %1652 = vmatpush1.bf16.msra.mxu0 %v3044_v52  ;;  %1693 = vmatpush1.bf16.msra.mxu1 %v3167_v1 }
 0x645   :  { %1653 = vmatprep.subr.bf16.mxu0 %v3051_v53  ;;  %1694 = vmatprep.subr.bf16.mxu1 %v3174_v38 }
 0x648   :  { %1654 = vmatpush1.bf16.msra.mxu0 %v3058_v5  ;;  %1695 = vmatpush1.bf16.msra.mxu1 %v3181_v8 }
 0x649   :  { %1997 = vmatprep.subr.bf16.mxu0 %v2275_v26 }
 0x6eb   :  { %v1558_v55 = vpop.f32.mrf.mxu0  ;;  %v1599_v40 = vpop.f32.mrf.mxu1 }
 0x6ec   :  { %v1606_v11 = vadd.f32 %v1558_v55, %v3344_v60  ;;  %v1608_v53 = vadd.f32 %v1599_v40, %v2810_v20 }
 0x6ed   :  { %v1560_v42 = vpop.f32.mrf.mxu0  ;;  %v1601_v43 = vpop.f32.mrf.mxu1 }
 0x6ee   :  { %v1973_v45 = vmul.f32 -1.442695, %v1606_v11  ;;  %v1607_v47 = vadd.f32 %v1560_v42, %v3345_v46  ;;  %v1975_v5 = vmul.f32 -1.442695, %v1608_v53  ;;  %v1609_v56 = vadd.f32 %v1601_v43, %v3346_v9  ;;  %v1979_v53 = vld [vmem:[%s3276_s7] ss:$0 sm:$0xff] }
 0x6ef   :  { %v1562_v48 = vpop.f32.mrf.mxu0  ;;  %v1603_v49 = vpop.f32.mrf.mxu1 }
 0x6f0   :  { %2209 = vpow2.f32 %v1973_v45  ;;  %v1974_v50 = vmul.f32 -1.442695, %v1607_v47 }
 0x6f1   :  { %v1563_v51 = vpop.f32.mrf.mxu0  ;;  %v1604_v52 = vpop.f32.mrf.mxu1 }
 0x6f2   :  { %2211 = vpow2.f32 %v1974_v50 }
 0x6f3   :  { %2213 = vpow2.f32 %v1975_v5 }
 0x6f4   :  { %2215 = vtanh.f32 %v1609_v56 }
 0x6fd   :  { %v2210_v23 = vpop.eup %2209 }
 0x6fe   :  { %v1619_v33 = vadd.f32 1.0, %v2210_v23 }
 0x6ff   :  { %v2212_v62 = vpop.eup %2211 }
 0x700   :  { %2217 = vrcp.f32 %v1619_v33  ;;  %v1620_v16 = vadd.f32 1.0, %v2212_v62  ;;  %v2214_v59 = vpop.eup %2213 }
 0x701   :  { %v2216_v54 = vpop.eup %2215  ;;  %v1621_v61 = vadd.f32 1.0, %v2214_v59 }
 0x702   :  { %2219 = vrcp.f32 %v1620_v16 }
 0x703   :  { %2221 = vrcp.f32 %v1621_v61 }
 0x70d   :  { %v2218_v0 = vpop.eup %2217 }
 0x70e   :  { %v1630_v19 = vmul.f32 %v2218_v0, %v2216_v54 }
 0x70f   :  { %v2220_v28 = vpop.eup %2219 }
 0x710   :  { %v1629_v39 = vmul.f32 %v2220_v28, %v3191_v6  ;;  %v2222_v1 = vpop.eup %2221 }
 0x712   :  { %v3231_v20 = vadd.f32 %v1630_v19, %v1629_v39 }
 0x714   :  { %2223 = vtanh.f32 %v3231_v20 }
 0x721   :  { %v2224_v38 = vpop.eup %2223 }
 0x722   :  { %v1633_v8 = vmul.f32 %v2224_v38, %v2222_v1 }
 0x724   :  { %v1638_v22 = vpack.c.bf16 %v1633_v8, %v1633_v8 }
 0x726   :  { %1672 = vmatmul.mubr.bf16.vlgmr.msra.gmra.mxu0 %v1638_v22  ;;  %1713 = vmatmul.mubr.bf16.vlgmr.msra.gmra.mxu1 %v1638_v22 }
 0x727   :  { %1998 = vmatpush3.bf16.msra.mxu0 %v2105_v24  ;;  %2013 = vmatprep.mubr.msk.bf16.mxu0 %vm2276_vm1, %v2275_v26 }
 0x728   :  { %1999 = vmatprep.subr.bf16.mxu0 %v2275_v26 }
 0x72b   :  { %2000 = vmatpush3.bf16.msra.mxu0 %v2106_v25 }
 0x72c   :  { %2001 = vmatprep.subr.bf16.mxu0 %v2275_v26 }
 0x72f   :  { %2002 = vmatpush3.bf16.msra.mxu0 %v2107_v29 }
 0x730   :  { %2003 = vmatprep.subr.bf16.mxu0 %v2275_v26 }
 0x733   :  { %2004 = vmatpush3.bf16.msra.mxu0 %v2108_v30 }
 0x734   :  { %2005 = vmatprep.subr.bf16.mxu0 %v2275_v26 }
 0x737   :  { %2006 = vmatpush3.bf16.msra.mxu0 %v2109_v31 }
 0x738   :  { %2007 = vmatprep.subr.bf16.mxu0 %v2275_v26 }
 0x73b   :  { %2008 = vmatpush3.bf16.msra.mxu0 %v2110_v32 }
 0x73c   :  { %2009 = vmatprep.subr.bf16.mxu0 %v2275_v26 }
 0x73f   :  { %2010 = vmatpush3.bf16.msra.mxu0 %v2111_v34 }
 0x740   :  { %2011 = vmatprep.subr.bf16.mxu0 %v2275_v26 }
 0x743   :  { %2012 = vmatpush3.bf16.msra.mxu0 %v2112_v35 }
 0x7e6   :  { %v1673_v36 = vpop.f32.mrf.mxu0  ;;  %v1714_v37 = vpop.f32.mrf.mxu1 }
 0x7e7   :  { %v1721_v15 = vadd.f32 %v1673_v36, %v3347_v21  ;;  %v1723_v7 = vadd.f32 %v1714_v37, %v3349_v10 }
 0x7e8   :  { %v1675_v41 = vpop.f32.mrf.mxu0  ;;  %v1716_v18 = vpop.f32.mrf.mxu1 }
 0x7e9   :  { %v1976_v13 = vmul.f32 -1.442695, %v1721_v15  ;;  %v1722_v2 = vadd.f32 %v1675_v41, %v3348_v17  ;;  %v1978_v6 = vmul.f32 -1.442695, %v1723_v7  ;;  %v1724_v58 = vadd.f32 %v1716_v18, %v3350_v57 }
 0x7ea   :  { %v1677_v63 = vpop.f32.mrf.mxu0  ;;  %v1718_v44 = vpop.f32.mrf.mxu1 }
 0x7eb   :  { %2225 = vpow2.f32 %v1976_v13  ;;  %v1977_v14 = vmul.f32 -1.442695, %v1722_v2 }
 0x7ec   :  { %v1678_v3 = vpop.f32.mrf.mxu0  ;;  %v1719_v4 = vpop.f32.mrf.mxu1 }
 0x7ed   :  { %2227 = vpow2.f32 %v1977_v14 }
 0x7ee   :  { %2229 = vpow2.f32 %v1978_v6 }
 0x7ef   :  { %2231 = vtanh.f32 %v1724_v58 }
 0x7f8   :  { %v2226_v27 = vpop.eup %2225 }
 0x7f9   :  { %v1734_v12 = vadd.f32 1.0, %v2226_v27 }
 0x7fa   :  { %v2228_v55 = vpop.eup %2227 }
 0x7fb   :  { %2233 = vrcp.f32 %v1734_v12  ;;  %v1735_v40 = vadd.f32 1.0, %v2228_v55  ;;  %v2230_v60 = vpop.eup %2229 }
 0x7fc   :  { %v2232_v11 = vpop.eup %2231  ;;  %v1736_v46 = vadd.f32 1.0, %v2230_v60 }
 0x7fd   :  { %2235 = vrcp.f32 %v1735_v40 }
 0x7fe   :  { %2237 = vrcp.f32 %v1736_v46 }
 0x808   :  { %v2234_v42 = vpop.eup %2233 }
 0x809   :  { %v1745_v43 = vmul.f32 %v2234_v42, %v2232_v11 }
 0x80a   :  { %v2236_v45 = vpop.eup %2235 }
 0x80b   :  { %v1744_v47 = vmul.f32 %v2236_v45, %v3231_v20  ;;  %v2238_v49 = vpop.eup %2237 }
 0x80d   :  { %v1746_v48 = vadd.f32 %v1745_v43, %v1744_v47 }
 0x80f   :  { %2239 = vtanh.f32 %v1746_v48 }
 0x81c   :  { %v2240_v50 = vpop.eup %2239 }
 0x81d   :  { %v1748_v51 = vmul.f32 %v2240_v50, %v2238_v49 }
 0x81f   :  { %v1754_v52 = vpack.c.bf16 %v1748_v51, %v1748_v51 }
 0x821   :  { %2014 = vmatmul.mubr.bf16.vlgmr.msra.gmra.mxu0 %v1754_v52 }
 0x8e1   :  { %v1860_v5 = vpop.f32.mrf.mxu0 }
 0x8e2   :  { %v1861_v9 = vadd.f32 %v1979_v53, %v1860_v5 }
 0x8e3   :  { %v2015_v56 = vpop.f32.mrf.mxu0 }
 0x8e4   :  { %1866 = vst [vmem:[%s3277_s8] sm:$0xff] %v1861_v9 }
 0x8e5   :  { %v1863_v23 = vpop.f32.mrf.mxu0 }
 0x8e7   :  { %v2016_v33 = vpop.f32.mrf.mxu0 }

</bundles_post_ra>
